<compile_context>
chip_gen: v7x
topology: tpu7x:2x2x1
jax: 0.10.0
libtpu: 0.0.40
codegen_flags: <defaults>
</compile_context>

<pallas_src>
import functools

import jax
import jax.numpy as jnp
from jax.experimental import pallas as pl
from jax.experimental.pallas import tpu as pltpu


def _siamese_lstm_kernel(x_ref, h0_ref, c0_ref, *rest,
                         num_layers, hidden_size, seq_len):
    # rest = (w_ih_t_0, w_hh_t_0, b_0, ..., w_ih_t_{L-1}, w_hh_t_{L-1}, b_{L-1},
    #         out_ref, buf_ref)
    weight_refs = rest[:3 * num_layers]
    out_ref = rest[3 * num_layers]
    buf_ref = rest[3 * num_layers + 1]     # (2T, H) inter-layer activations

    H = hidden_size
    T = seq_len
    B = 2                                   # the two siamese branches, on sublanes

    # lane-index mask selecting the g (cell-candidate) gate lanes [2H, 3H)
    lane = jax.lax.broadcasted_iota(jnp.int32, (B, 4 * H), 1)
    g_mask = (lane >= 2 * H) & (lane < 3 * H)

    layer_in = x_ref[...]                   # (2T, E): row 2t+b = branch b, timestep t
    h_last = None

    for l in range(num_layers):             # static unroll over layers
        w_ih_t = weight_refs[3 * l][...]        # (E_l, 4H) pre-transposed
        w_hh_t = weight_refs[3 * l + 1][...]    # (H,   4H) pre-transposed
        b = weight_refs[3 * l + 2][...]         # (1,   4H) = b_ih + b_hh

        # Hoisted input projection for every timestep of this layer: one MXU push.
        proj = jnp.dot(layer_in, w_ih_t,
                       preferred_element_type=jnp.float32) + b      # (2T, 4H)

        h = h0_ref[2 * l:2 * l + 2, :]          # (2, H) initial hidden (both branches)
        c = c0_ref[2 * l:2 * l + 2, :]          # (2, H) initial cell

        for t in range(T):                      # static unroll; serial h-recurrence
            gates = proj[B * t:B * (t + 1), :] + jnp.dot(
                h, w_hh_t, preferred_element_type=jnp.float32)      # (2, 4H)
            # One sigmoid + one tanh over the full vreg, select tanh on g-gate lanes.
            act = jnp.where(g_mask, jnp.tanh(gates), jax.nn.sigmoid(gates))
            i_g = act[:, 0 * H:1 * H]
            f_g = act[:, 1 * H:2 * H]
            g_g = act[:, 2 * H:3 * H]
            o_g = act[:, 3 * H:4 * H]
            c = f_g * c + i_g * g_g
            h = o_g * jnp.tanh(c)
            if l + 1 < num_layers:
                buf_ref[B * t:B * (t + 1), :] = h   # stash for next layer's projection

        h_last = h
        if l + 1 < num_layers:
            layer_in = buf_ref[...]             # (2T, H) inputs for the next layer

    # Head: 5 * exp(-||o1 - o2||_1); o1 = row 0, o2 = row 1 of the last hidden.
    diff = jnp.abs(h_last[0:1, :] - h_last[1:2, :])             # (1, H)
    d = jnp.sum(diff, axis=-1, keepdims=True)                   # (1, 1)
    res = 5.0 * jnp.exp(-d)                                     # (1, 1)
    out_ref[...] = jnp.broadcast_to(res, out_ref.shape)         # lane-dense store


def siamese_lstm(s1, s2, h1, c1, h2, c2, params):
    """s1, s2: (T, 1, E); h*, c*: (L, 1, H); params: [(w_ih, w_hh, b_combined)]."""
    T, _, E = s1.shape
    L, _, H = h1.shape

    # Time-major, branch-minor packing: row index = 2*t + branch / 2*l + branch.
    x = jnp.stack([s1[:, 0, :], s2[:, 0, :]], axis=1).reshape(2 * T, E)
    h0 = jnp.stack([h1[:, 0, :], h2[:, 0, :]], axis=1).reshape(2 * L, H)
    c0 = jnp.stack([c1[:, 0, :], c2[:, 0, :]], axis=1).reshape(2 * L, H)

    # Pre-transpose weights once on the host (MXU-native layout inside the kernel).
    weight_args = []
    for (w_ih, w_hh, b) in params:
        weight_args += [w_ih.T, w_hh.T, b.reshape(1, 4 * H)]

    n_in = 3 + 3 * L
    kernel = functools.partial(_siamese_lstm_kernel, num_layers=L,
                               hidden_size=H, seq_len=T)
    out = pl.pallas_call(
        kernel,
        out_shape=jax.ShapeDtypeStruct((1, 128), jnp.float32),
        in_specs=[pl.BlockSpec(memory_space=pltpu.MemorySpace.VMEM)
                  for _ in range(n_in)],
        out_specs=pl.BlockSpec(memory_space=pltpu.MemorySpace.VMEM),
        scratch_shapes=[pltpu.VMEM((2 * T, H), jnp.float32)],
    )(x, h0, c0, *weight_args)
    return out[0, 0]


# ---------------- pure-JAX reference (for sanity check) ----------------
def _lstm_ref(x_seq, h0, c0, params):
    H = h0.shape[2]
    h = h0[:, 0, :]
    c = c0[:, 0, :]
    out = None
    for t in range(x_seq.shape[0]):
        inp = x_seq[t, 0]
        new_h, new_c = [], []
        for l, (w_ih, w_hh, b) in enumerate(params):
            gates = w_ih @ inp + w_hh @ h[l] + b[0]
            i = jax.nn.sigmoid(gates[0:H])
            f = jax.nn.sigmoid(gates[H:2 * H])
            g = jnp.tanh(gates[2 * H:3 * H])
            o = jax.nn.sigmoid(gates[3 * H:4 * H])
            cc = f * c[l] + i * g
            hh = o * jnp.tanh(cc)
            new_h.append(hh)
            new_c.append(cc)
            inp = hh
        h = jnp.stack(new_h)
        c = jnp.stack(new_c)
        out = inp
    return out[None, :]


if __name__ == "__main__":
    embed_size, hidden_size, num_layers, batch_size = 32, 32, 2, 1
    seq_len = 8

    key = jax.random.PRNGKey(0)
    keys = jax.random.split(key, 16)
    kidx = 0

    # deterministic LSTM parameters (PyTorch-style uniform(-1/sqrt(H), 1/sqrt(H)))
    bound = 1.0 / float(hidden_size) ** 0.5
    params = []
    for l in range(num_layers):
        in_sz = embed_size if l == 0 else hidden_size
        w_ih = jax.random.uniform(keys[kidx], (4 * hidden_size, in_sz),
                                  jnp.float32, -bound, bound); kidx += 1
        w_hh = jax.random.uniform(keys[kidx], (4 * hidden_size, hidden_size),
                                  jnp.float32, -bound, bound); kidx += 1
        b_ih = jax.random.uniform(keys[kidx], (4 * hidden_size,),
                                  jnp.float32, -bound, bound); kidx += 1
        b_hh = jax.random.uniform(keys[kidx], (4 * hidden_size,),
                                  jnp.float32, -bound, bound); kidx += 1
        params.append((w_ih, w_hh, (b_ih + b_hh).reshape(1, 4 * hidden_size)))

    # deterministic inputs + randn initial hidden/cell (initHiddenCell analogue)
    s1 = jax.random.normal(keys[kidx], (seq_len, 1, embed_size), jnp.float32); kidx += 1
    s2 = jax.random.normal(keys[kidx], (seq_len, 1, embed_size), jnp.float32); kidx += 1
    h1 = jax.random.normal(keys[kidx], (num_layers, 1, hidden_size), jnp.float32); kidx += 1
    c1 = jax.random.normal(keys[kidx], (num_layers, 1, hidden_size), jnp.float32); kidx += 1
    h2 = jax.random.normal(keys[kidx], (num_layers, 1, hidden_size), jnp.float32); kidx += 1
    c2 = jax.random.normal(keys[kidx], (num_layers, 1, hidden_size), jnp.float32); kidx += 1

    out = siamese_lstm(s1, s2, h1, c1, h2, c2, params)
    jax.block_until_ready(out)

    # sanity-check against pure-JAX reference
    o1_ref = _lstm_ref(s1, h1, c1, params)
    o2_ref = _lstm_ref(s2, h2, c2, params)
    ref = 5.0 * jnp.exp(-jnp.sum(jnp.abs(o1_ref - o2_ref)))
    assert jnp.allclose(out, ref, rtol=1e-5, atol=1e-5), (out, ref)

    print("KERNEL_OK")
</pallas_src>

<mosaic_0001>
module attributes {stable_mosaic.version = 11 : i64} {
  func.func @_siamese_lstm_kernel(%arg0: memref<16x32xf32, #tpu.memory_space<vmem>>, %arg1: memref<4x32xf32, #tpu.memory_space<vmem>>, %arg2: memref<4x32xf32, #tpu.memory_space<vmem>>, %arg3: memref<32x128xf32, #tpu.memory_space<vmem>>, %arg4: memref<32x128xf32, #tpu.memory_space<vmem>>, %arg5: memref<1x128xf32, #tpu.memory_space<vmem>>, %arg6: memref<32x128xf32, #tpu.memory_space<vmem>>, %arg7: memref<32x128xf32, #tpu.memory_space<vmem>>, %arg8: memref<1x128xf32, #tpu.memory_space<vmem>>, %arg9: memref<1x128xf32, #tpu.memory_space<vmem>>, %arg10: memref<16x32xf32, #tpu.memory_space<vmem>>) attributes {dimension_semantics = [], scalar_prefetch = 0 : i64, scratch_operands = 1 : i64, tpu.core_type = #tpu.core_type<tc>} {
    %0 = tpu.iota {dimensions = array<i32: 1>} : vector<2x128xi32>
    %c64_i32 = arith.constant 64 : i32
    %1 = vector.broadcast %c64_i32 : i32 to vector<2x128xi32>
    %2 = arith.cmpi sge, %0, %1 : vector<2x128xi32>
    %c96_i32 = arith.constant 96 : i32
    %3 = vector.broadcast %c96_i32 : i32 to vector<2x128xi32>
    %4 = arith.cmpi slt, %0, %3 : vector<2x128xi32>
    %5 = arith.andi %2, %4 : vector<2x128xi1>
    %c0 = arith.constant 0 : index
    %c0_0 = arith.constant 0 : index
    %6 = vector.load %arg0[%c0, %c0_0] : memref<16x32xf32, #tpu.memory_space<vmem>>, vector<16x32xf32>
    %c0_1 = arith.constant 0 : index
    %c0_2 = arith.constant 0 : index
    %7 = vector.load %arg3[%c0_1, %c0_2] : memref<32x128xf32, #tpu.memory_space<vmem>>, vector<32x128xf32>
    %c0_3 = arith.constant 0 : index
    %c0_4 = arith.constant 0 : index
    %8 = vector.load %arg4[%c0_3, %c0_4] : memref<32x128xf32, #tpu.memory_space<vmem>>, vector<32x128xf32>
    %c0_5 = arith.constant 0 : index
    %c0_6 = arith.constant 0 : index
    %9 = vector.load %arg5[%c0_5, %c0_6] : memref<1x128xf32, #tpu.memory_space<vmem>>, vector<1x128xf32>
    %cst = arith.constant dense<0.000000e+00> : vector<16x128xf32>
    %10 = tpu.matmul %6, %7, %cst {dimension_numbers = #tpu.dot_dimension_numbers<[1], [0], [0], [1], [0, 0, 1, 1], [], []>} : vector<16x32xf32>, vector<32x128xf32>, vector<16x128xf32> -> vector<16x128xf32>
    %11 = vector.broadcast %9 : vector<1x128xf32> to vector<16x128xf32>
    %12 = arith.addf %10, %11 : vector<16x128xf32>
    %c0_7 = arith.constant 0 : index
    %c0_8 = arith.constant 0 : index
    %13 = vector.load %arg1[%c0_7, %c0_8] : memref<4x32xf32, #tpu.memory_space<vmem>>, vector<2x32xf32>
    %c0_9 = arith.constant 0 : index
    %c0_10 = arith.constant 0 : index
    %14 = vector.load %arg2[%c0_9, %c0_10] : memref<4x32xf32, #tpu.memory_space<vmem>>, vector<2x32xf32>
    %15 = vector.extract_strided_slice %12 {offsets = [0, 0], sizes = [2, 128], strides = [1, 1]} : vector<16x128xf32> to vector<2x128xf32>
    %cst_11 = arith.constant dense<0.000000e+00> : vector<2x128xf32>
    %16 = tpu.matmul %13, %8, %cst_11 {dimension_numbers = #tpu.dot_dimension_numbers<[1], [0], [0], [1], [0, 0, 1, 1], [], []>} : vector<2x32xf32>, vector<32x128xf32>, vector<2x128xf32> -> vector<2x128xf32>
    %17 = arith.addf %15, %16 : vector<2x128xf32>
    %18 = math.tanh %17 : vector<2x128xf32>
    %19 = arith.negf %17 : vector<2x128xf32>
    %20 = math.exp %19 : vector<2x128xf32>
    %cst_12 = arith.constant 1.000000e+00 : f32
    %21 = vector.broadcast %cst_12 : f32 to vector<2x128xf32>
    %22 = arith.addf %21, %20 : vector<2x128xf32>
    %23 = arith.divf %21, %22 : vector<2x128xf32>
    %24 = arith.select %5, %18, %23 : vector<2x128xi1>, vector<2x128xf32>
    %25 = vector.extract_strided_slice %24 {offsets = [0, 0], sizes = [2, 32], strides = [1, 1]} : vector<2x128xf32> to vector<2x32xf32>
    %26 = vector.extract_strided_slice %24 {offsets = [0, 32], sizes = [2, 32], strides = [1, 1]} : vector<2x128xf32> to vector<2x32xf32>
    %27 = vector.extract_strided_slice %24 {offsets = [0, 64], sizes = [2, 32], strides = [1, 1]} : vector<2x128xf32> to vector<2x32xf32>
    %28 = vector.extract_strided_slice %24 {offsets = [0, 96], sizes = [2, 32], strides = [1, 1]} : vector<2x128xf32> to vector<2x32xf32>
    %29 = arith.mulf %26, %14 : vector<2x32xf32>
    %30 = arith.mulf %25, %27 : vector<2x32xf32>
    %31 = arith.addf %29, %30 : vector<2x32xf32>
    %32 = math.tanh %31 : vector<2x32xf32>
    %33 = arith.mulf %28, %32 : vector<2x32xf32>
    %c0_13 = arith.constant 0 : index
    %c0_14 = arith.constant 0 : index
    %34 = vector.load %arg10[%c0_13, %c0_14] : memref<16x32xf32, #tpu.memory_space<vmem>>, vector<2x32xf32>
    tpu.vector_store %arg10[%c0_13, %c0_14], %33 {strides = array<i32>} : memref<16x32xf32, #tpu.memory_space<vmem>>, vector<2x32xf32>,
    %35 = vector.extract_strided_slice %12 {offsets = [2, 0], sizes = [2, 128], strides = [1, 1]} : vector<16x128xf32> to vector<2x128xf32>
    %cst_15 = arith.constant dense<0.000000e+00> : vector<2x128xf32>
    %36 = tpu.matmul %33, %8, %cst_15 {dimension_numbers = #tpu.dot_dimension_numbers<[1], [0], [0], [1], [0, 0, 1, 1], [], []>} : vector<2x32xf32>, vector<32x128xf32>, vector<2x128xf32> -> vector<2x128xf32>
    %37 = arith.addf %35, %36 : vector<2x128xf32>
    %38 = math.tanh %37 : vector<2x128xf32>
    %39 = arith.negf %37 : vector<2x128xf32>
    %40 = math.exp %39 : vector<2x128xf32>
    %cst_16 = arith.constant 1.000000e+00 : f32
    %41 = vector.broadcast %cst_16 : f32 to vector<2x128xf32>
    %42 = arith.addf %41, %40 : vector<2x128xf32>
    %43 = arith.divf %41, %42 : vector<2x128xf32>
    %44 = arith.select %5, %38, %43 : vector<2x128xi1>, vector<2x128xf32>
    %45 = vector.extract_strided_slice %44 {offsets = [0, 0], sizes = [2, 32], strides = [1, 1]} : vector<2x128xf32> to vector<2x32xf32>
    %46 = vector.extract_strided_slice %44 {offsets = [0, 32], sizes = [2, 32], strides = [1, 1]} : vector<2x128xf32> to vector<2x32xf32>
    %47 = vector.extract_strided_slice %44 {offsets = [0, 64], sizes = [2, 32], strides = [1, 1]} : vector<2x128xf32> to vector<2x32xf32>
    %48 = vector.extract_strided_slice %44 {offsets = [0, 96], sizes = [2, 32], strides = [1, 1]} : vector<2x128xf32> to vector<2x32xf32>
    %49 = arith.mulf %46, %31 : vector<2x32xf32>
    %50 = arith.mulf %45, %47 : vector<2x32xf32>
    %51 = arith.addf %49, %50 : vector<2x32xf32>
    %52 = math.tanh %51 : vector<2x32xf32>
    %53 = arith.mulf %48, %52 : vector<2x32xf32>
    %c2 = arith.constant 2 : index
    %c0_17 = arith.constant 0 : index
    %54 = vector.load %arg10[%c2, %c0_17] : memref<16x32xf32, #tpu.memory_space<vmem>>, vector<2x32xf32>
    tpu.vector_store %arg10[%c2, %c0_17], %53 {strides = array<i32>} : memref<16x32xf32, #tpu.memory_space<vmem>>, vector<2x32xf32>,
    %55 = vector.extract_strided_slice %12 {offsets = [4, 0], sizes = [2, 128], strides = [1, 1]} : vector<16x128xf32> to vector<2x128xf32>
    %cst_18 = arith.constant dense<0.000000e+00> : vector<2x128xf32>
    %56 = tpu.matmul %53, %8, %cst_18 {dimension_numbers = #tpu.dot_dimension_numbers<[1], [0], [0], [1], [0, 0, 1, 1], [], []>} : vector<2x32xf32>, vector<32x128xf32>, vector<2x128xf32> -> vector<2x128xf32>
    %57 = arith.addf %55, %56 : vector<2x128xf32>
    %58 = math.tanh %57 : vector<2x128xf32>
    %59 = arith.negf %57 : vector<2x128xf32>
    %60 = math.exp %59 : vector<2x128xf32>
    %cst_19 = arith.constant 1.000000e+00 : f32
    %61 = vector.broadcast %cst_19 : f32 to vector<2x128xf32>
    %62 = arith.addf %61, %60 : vector<2x128xf32>
    %63 = arith.divf %61, %62 : vector<2x128xf32>
    %64 = arith.select %5, %58, %63 : vector<2x128xi1>, vector<2x128xf32>
    %65 = vector.extract_strided_slice %64 {offsets = [0, 0], sizes = [2, 32], strides = [1, 1]} : vector<2x128xf32> to vector<2x32xf32>
    %66 = vector.extract_strided_slice %64 {offsets = [0, 32], sizes = [2, 32], strides = [1, 1]} : vector<2x128xf32> to vector<2x32xf32>
    %67 = vector.extract_strided_slice %64 {offsets = [0, 64], sizes = [2, 32], strides = [1, 1]} : vector<2x128xf32> to vector<2x32xf32>
    %68 = vector.extract_strided_slice %64 {offsets = [0, 96], sizes = [2, 32], strides = [1, 1]} : vector<2x128xf32> to vector<2x32xf32>
    %69 = arith.mulf %66, %51 : vector<2x32xf32>
    %70 = arith.mulf %65, %67 : vector<2x32xf32>
    %71 = arith.addf %69, %70 : vector<2x32xf32>
    %72 = math.tanh %71 : vector<2x32xf32>
    %73 = arith.mulf %68, %72 : vector<2x32xf32>
    %c4 = arith.constant 4 : index
    %c0_20 = arith.constant 0 : index
    %74 = vector.load %arg10[%c4, %c0_20] : memref<16x32xf32, #tpu.memory_space<vmem>>, vector<2x32xf32>
    tpu.vector_store %arg10[%c4, %c0_20], %73 {strides = array<i32>} : memref<16x32xf32, #tpu.memory_space<vmem>>, vector<2x32xf32>,
    %75 = vector.extract_strided_slice %12 {offsets = [6, 0], sizes = [2, 128], strides = [1, 1]} : vector<16x128xf32> to vector<2x128xf32>
    %cst_21 = arith.constant dense<0.000000e+00> : vector<2x128xf32>
    %76 = tpu.matmul %73, %8, %cst_21 {dimension_numbers = #tpu.dot_dimension_numbers<[1], [0], [0], [1], [0, 0, 1, 1], [], []>} : vector<2x32xf32>, vector<32x128xf32>, vector<2x128xf32> -> vector<2x128xf32>
    %77 = arith.addf %75, %76 : vector<2x128xf32>
    %78 = math.tanh %77 : vector<2x128xf32>
    %79 = arith.negf %77 : vector<2x128xf32>
    %80 = math.exp %79 : vector<2x128xf32>
    %cst_22 = arith.constant 1.000000e+00 : f32
    %81 = vector.broadcast %cst_22 : f32 to vector<2x128xf32>
    %82 = arith.addf %81, %80 : vector<2x128xf32>
    %83 = arith.divf %81, %82 : vector<2x128xf32>
    %84 = arith.select %5, %78, %83 : vector<2x128xi1>, vector<2x128xf32>
    %85 = vector.extract_strided_slice %84 {offsets = [0, 0], sizes = [2, 32], strides = [1, 1]} : vector<2x128xf32> to vector<2x32xf32>
    %86 = vector.extract_strided_slice %84 {offsets = [0, 32], sizes = [2, 32], strides = [1, 1]} : vector<2x128xf32> to vector<2x32xf32>
    %87 = vector.extract_strided_slice %84 {offsets = [0, 64], sizes = [2, 32], strides = [1, 1]} : vector<2x128xf32> to vector<2x32xf32>
    %88 = vector.extract_strided_slice %84 {offsets = [0, 96], sizes = [2, 32], strides = [1, 1]} : vector<2x128xf32> to vector<2x32xf32>
    %89 = arith.mulf %86, %71 : vector<2x32xf32>
    %90 = arith.mulf %85, %87 : vector<2x32xf32>
    %91 = arith.addf %89, %90 : vector<2x32xf32>
    %92 = math.tanh %91 : vector<2x32xf32>
    %93 = arith.mulf %88, %92 : vector<2x32xf32>
    %c6 = arith.constant 6 : index
    %c0_23 = arith.constant 0 : index
    %94 = vector.load %arg10[%c6, %c0_23] : memref<16x32xf32, #tpu.memory_space<vmem>>, vector<2x32xf32>
    tpu.vector_store %arg10[%c6, %c0_23], %93 {strides = array<i32>} : memref<16x32xf32, #tpu.memory_space<vmem>>, vector<2x32xf32>,
    %95 = vector.extract_strided_slice %12 {offsets = [8, 0], sizes = [2, 128], strides = [1, 1]} : vector<16x128xf32> to vector<2x128xf32>
    %cst_24 = arith.constant dense<0.000000e+00> : vector<2x128xf32>
    %96 = tpu.matmul %93, %8, %cst_24 {dimension_numbers = #tpu.dot_dimension_numbers<[1], [0], [0], [1], [0, 0, 1, 1], [], []>} : vector<2x32xf32>, vector<32x128xf32>, vector<2x128xf32> -> vector<2x128xf32>
    %97 = arith.addf %95, %96 : vector<2x128xf32>
    %98 = math.tanh %97 : vector<2x128xf32>
    %99 = arith.negf %97 : vector<2x128xf32>
    %100 = math.exp %99 : vector<2x128xf32>
    %cst_25 = arith.constant 1.000000e+00 : f32
    %101 = vector.broadcast %cst_25 : f32 to vector<2x128xf32>
    %102 = arith.addf %101, %100 : vector<2x128xf32>
    %103 = arith.divf %101, %102 : vector<2x128xf32>
    %104 = arith.select %5, %98, %103 : vector<2x128xi1>, vector<2x128xf32>
    %105 = vector.extract_strided_slice %104 {offsets = [0, 0], sizes = [2, 32], strides = [1, 1]} : vector<2x128xf32> to vector<2x32xf32>
    %106 = vector.extract_strided_slice %104 {offsets = [0, 32], sizes = [2, 32], strides = [1, 1]} : vector<2x128xf32> to vector<2x32xf32>
    %107 = vector.extract_strided_slice %104 {offsets = [0, 64], sizes = [2, 32], strides = [1, 1]} : vector<2x128xf32> to vector<2x32xf32>
    %108 = vector.extract_strided_slice %104 {offsets = [0, 96], sizes = [2, 32], strides = [1, 1]} : vector<2x128xf32> to vector<2x32xf32>
    %109 = arith.mulf %106, %91 : vector<2x32xf32>
    %110 = arith.mulf %105, %107 : vector<2x32xf32>
    %111 = arith.addf %109, %110 : vector<2x32xf32>
    %112 = math.tanh %111 : vector<2x32xf32>
    %113 = arith.mulf %108, %112 : vector<2x32xf32>
    %c8 = arith.constant 8 : index
    %c0_26 = arith.constant 0 : index
    %114 = vector.load %arg10[%c8, %c0_26] : memref<16x32xf32, #tpu.memory_space<vmem>>, vector<2x32xf32>
    tpu.vector_store %arg10[%c8, %c0_26], %113 {strides = array<i32>} : memref<16x32xf32, #tpu.memory_space<vmem>>, vector<2x32xf32>,
    %115 = vector.extract_strided_slice %12 {offsets = [10, 0], sizes = [2, 128], strides = [1, 1]} : vector<16x128xf32> to vector<2x128xf32>
    %cst_27 = arith.constant dense<0.000000e+00> : vector<2x128xf32>
    %116 = tpu.matmul %113, %8, %cst_27 {dimension_numbers = #tpu.dot_dimension_numbers<[1], [0], [0], [1], [0, 0, 1, 1], [], []>} : vector<2x32xf32>, vector<32x128xf32>, vector<2x128xf32> -> vector<2x128xf32>
    %117 = arith.addf %115, %116 : vector<2x128xf32>
    %118 = math.tanh %117 : vector<2x128xf32>
    %119 = arith.negf %117 : vector<2x128xf32>
    %120 = math.exp %119 : vector<2x128xf32>
    %cst_28 = arith.constant 1.000000e+00 : f32
    %121 = vector.broadcast %cst_28 : f32 to vector<2x128xf32>
    %122 = arith.addf %121, %120 : vector<2x128xf32>
    %123 = arith.divf %121, %122 : vector<2x128xf32>
    %124 = arith.select %5, %118, %123 : vector<2x128xi1>, vector<2x128xf32>
    %125 = vector.extract_strided_slice %124 {offsets = [0, 0], sizes = [2, 32], strides = [1, 1]} : vector<2x128xf32> to vector<2x32xf32>
    %126 = vector.extract_strided_slice %124 {offsets = [0, 32], sizes = [2, 32], strides = [1, 1]} : vector<2x128xf32> to vector<2x32xf32>
    %127 = vector.extract_strided_slice %124 {offsets = [0, 64], sizes = [2, 32], strides = [1, 1]} : vector<2x128xf32> to vector<2x32xf32>
    %128 = vector.extract_strided_slice %124 {offsets = [0, 96], sizes = [2, 32], strides = [1, 1]} : vector<2x128xf32> to vector<2x32xf32>
    %129 = arith.mulf %126, %111 : vector<2x32xf32>
    %130 = arith.mulf %125, %127 : vector<2x32xf32>
    %131 = arith.addf %129, %130 : vector<2x32xf32>
    %132 = math.tanh %131 : vector<2x32xf32>
    %133 = arith.mulf %128, %132 : vector<2x32xf32>
    %c10 = arith.constant 10 : index
    %c0_29 = arith.constant 0 : index
    %134 = vector.load %arg10[%c10, %c0_29] : memref<16x32xf32, #tpu.memory_space<vmem>>, vector<2x32xf32>
    tpu.vector_store %arg10[%c10, %c0_29], %133 {strides = array<i32>} : memref<16x32xf32, #tpu.memory_space<vmem>>, vector<2x32xf32>,
    %135 = vector.extract_strided_slice %12 {offsets = [12, 0], sizes = [2, 128], strides = [1, 1]} : vector<16x128xf32> to vector<2x128xf32>
    %cst_30 = arith.constant dense<0.000000e+00> : vector<2x128xf32>
    %136 = tpu.matmul %133, %8, %cst_30 {dimension_numbers = #tpu.dot_dimension_numbers<[1], [0], [0], [1], [0, 0, 1, 1], [], []>} : vector<2x32xf32>, vector<32x128xf32>, vector<2x128xf32> -> vector<2x128xf32>
    %137 = arith.addf %135, %136 : vector<2x128xf32>
    %138 = math.tanh %137 : vector<2x128xf32>
    %139 = arith.negf %137 : vector<2x128xf32>
    %140 = math.exp %139 : vector<2x128xf32>
    %cst_31 = arith.constant 1.000000e+00 : f32
    %141 = vector.broadcast %cst_31 : f32 to vector<2x128xf32>
    %142 = arith.addf %141, %140 : vector<2x128xf32>
    %143 = arith.divf %141, %142 : vector<2x128xf32>
    %144 = arith.select %5, %138, %143 : vector<2x128xi1>, vector<2x128xf32>
    %145 = vector.extract_strided_slice %144 {offsets = [0, 0], sizes = [2, 32], strides = [1, 1]} : vector<2x128xf32> to vector<2x32xf32>
    %146 = vector.extract_strided_slice %144 {offsets = [0, 32], sizes = [2, 32], strides = [1, 1]} : vector<2x128xf32> to vector<2x32xf32>
    %147 = vector.extract_strided_slice %144 {offsets = [0, 64], sizes = [2, 32], strides = [1, 1]} : vector<2x128xf32> to vector<2x32xf32>
    %148 = vector.extract_strided_slice %144 {offsets = [0, 96], sizes = [2, 32], strides = [1, 1]} : vector<2x128xf32> to vector<2x32xf32>
    %149 = arith.mulf %146, %131 : vector<2x32xf32>
    %150 = arith.mulf %145, %147 : vector<2x32xf32>
    %151 = arith.addf %149, %150 : vector<2x32xf32>
    %152 = math.tanh %151 : vector<2x32xf32>
    %153 = arith.mulf %148, %152 : vector<2x32xf32>
    %c12 = arith.constant 12 : index
    %c0_32 = arith.constant 0 : index
    %154 = vector.load %arg10[%c12, %c0_32] : memref<16x32xf32, #tpu.memory_space<vmem>>, vector<2x32xf32>
    tpu.vector_store %arg10[%c12, %c0_32], %153 {strides = array<i32>} : memref<16x32xf32, #tpu.memory_space<vmem>>, vector<2x32xf32>,
    %155 = vector.extract_strided_slice %12 {offsets = [14, 0], sizes = [2, 128], strides = [1, 1]} : vector<16x128xf32> to vector<2x128xf32>
    %cst_33 = arith.constant dense<0.000000e+00> : vector<2x128xf32>
    %156 = tpu.matmul %153, %8, %cst_33 {dimension_numbers = #tpu.dot_dimension_numbers<[1], [0], [0], [1], [0, 0, 1, 1], [], []>} : vector<2x32xf32>, vector<32x128xf32>, vector<2x128xf32> -> vector<2x128xf32>
    %157 = arith.addf %155, %156 : vector<2x128xf32>
    %158 = math.tanh %157 : vector<2x128xf32>
    %159 = arith.negf %157 : vector<2x128xf32>
    %160 = math.exp %159 : vector<2x128xf32>
    %cst_34 = arith.constant 1.000000e+00 : f32
    %161 = vector.broadcast %cst_34 : f32 to vector<2x128xf32>
    %162 = arith.addf %161, %160 : vector<2x128xf32>
    %163 = arith.divf %161, %162 : vector<2x128xf32>
    %164 = arith.select %5, %158, %163 : vector<2x128xi1>, vector<2x128xf32>
    %165 = vector.extract_strided_slice %164 {offsets = [0, 0], sizes = [2, 32], strides = [1, 1]} : vector<2x128xf32> to vector<2x32xf32>
    %166 = vector.extract_strided_slice %164 {offsets = [0, 32], sizes = [2, 32], strides = [1, 1]} : vector<2x128xf32> to vector<2x32xf32>
    %167 = vector.extract_strided_slice %164 {offsets = [0, 64], sizes = [2, 32], strides = [1, 1]} : vector<2x128xf32> to vector<2x32xf32>
    %168 = vector.extract_strided_slice %164 {offsets = [0, 96], sizes = [2, 32], strides = [1, 1]} : vector<2x128xf32> to vector<2x32xf32>
    %169 = arith.mulf %166, %151 : vector<2x32xf32>
    %170 = arith.mulf %165, %167 : vector<2x32xf32>
    %171 = arith.addf %169, %170 : vector<2x32xf32>
    %172 = math.tanh %171 : vector<2x32xf32>
    %173 = arith.mulf %168, %172 : vector<2x32xf32>
    %c14 = arith.constant 14 : index
    %c0_35 = arith.constant 0 : index
    %174 = vector.load %arg10[%c14, %c0_35] : memref<16x32xf32, #tpu.memory_space<vmem>>, vector<2x32xf32>
    tpu.vector_store %arg10[%c14, %c0_35], %173 {strides = array<i32>} : memref<16x32xf32, #tpu.memory_space<vmem>>, vector<2x32xf32>,
    %c0_36 = arith.constant 0 : index
    %c0_37 = arith.constant 0 : index
    %175 = vector.load %arg10[%c0_36, %c0_37] : memref<16x32xf32, #tpu.memory_space<vmem>>, vector<16x32xf32>
    %c0_38 = arith.constant 0 : index
    %c0_39 = arith.constant 0 : index
    %176 = vector.load %arg6[%c0_38, %c0_39] : memref<32x128xf32, #tpu.memory_space<vmem>>, vector<32x128xf32>
    %c0_40 = arith.constant 0 : index
    %c0_41 = arith.constant 0 : index
    %177 = vector.load %arg7[%c0_40, %c0_41] : memref<32x128xf32, #tpu.memory_space<vmem>>, vector<32x128xf32>
    %c0_42 = arith.constant 0 : index
    %c0_43 = arith.constant 0 : index
    %178 = vector.load %arg8[%c0_42, %c0_43] : memref<1x128xf32, #tpu.memory_space<vmem>>, vector<1x128xf32>
    %cst_44 = arith.constant dense<0.000000e+00> : vector<16x128xf32>
    %179 = tpu.matmul %175, %176, %cst_44 {dimension_numbers = #tpu.dot_dimension_numbers<[1], [0], [0], [1], [0, 0, 1, 1], [], []>} : vector<16x32xf32>, vector<32x128xf32>, vector<16x128xf32> -> vector<16x128xf32>
    %180 = vector.broadcast %178 : vector<1x128xf32> to vector<16x128xf32>
    %181 = arith.addf %179, %180 : vector<16x128xf32>
    %c2_45 = arith.constant 2 : index
    %c0_46 = arith.constant 0 : index
    %182 = vector.load %arg1[%c2_45, %c0_46] : memref<4x32xf32, #tpu.memory_space<vmem>>, vector<2x32xf32>
    %c2_47 = arith.constant 2 : index
    %c0_48 = arith.constant 0 : index
    %183 = vector.load %arg2[%c2_47, %c0_48] : memref<4x32xf32, #tpu.memory_space<vmem>>, vector<2x32xf32>
    %184 = vector.extract_strided_slice %181 {offsets = [0, 0], sizes = [2, 128], strides = [1, 1]} : vector<16x128xf32> to vector<2x128xf32>
    %cst_49 = arith.constant dense<0.000000e+00> : vector<2x128xf32>
    %185 = tpu.matmul %182, %177, %cst_49 {dimension_numbers = #tpu.dot_dimension_numbers<[1], [0], [0], [1], [0, 0, 1, 1], [], []>} : vector<2x32xf32>, vector<32x128xf32>, vector<2x128xf32> -> vector<2x128xf32>
    %186 = arith.addf %184, %185 : vector<2x128xf32>
    %187 = math.tanh %186 : vector<2x128xf32>
    %188 = arith.negf %186 : vector<2x128xf32>
    %189 = math.exp %188 : vector<2x128xf32>
    %cst_50 = arith.constant 1.000000e+00 : f32
    %190 = vector.broadcast %cst_50 : f32 to vector<2x128xf32>
    %191 = arith.addf %190, %189 : vector<2x128xf32>
    %192 = arith.divf %190, %191 : vector<2x128xf32>
    %193 = arith.select %5, %187, %192 : vector<2x128xi1>, vector<2x128xf32>
    %194 = vector.extract_strided_slice %193 {offsets = [0, 0], sizes = [2, 32], strides = [1, 1]} : vector<2x128xf32> to vector<2x32xf32>
    %195 = vector.extract_strided_slice %193 {offsets = [0, 32], sizes = [2, 32], strides = [1, 1]} : vector<2x128xf32> to vector<2x32xf32>
    %196 = vector.extract_strided_slice %193 {offsets = [0, 64], sizes = [2, 32], strides = [1, 1]} : vector<2x128xf32> to vector<2x32xf32>
    %197 = vector.extract_strided_slice %193 {offsets = [0, 96], sizes = [2, 32], strides = [1, 1]} : vector<2x128xf32> to vector<2x32xf32>
    %198 = arith.mulf %195, %183 : vector<2x32xf32>
    %199 = arith.mulf %194, %196 : vector<2x32xf32>
    %200 = arith.addf %198, %199 : vector<2x32xf32>
    %201 = math.tanh %200 : vector<2x32xf32>
    %202 = arith.mulf %197, %201 : vector<2x32xf32>
    %203 = vector.extract_strided_slice %181 {offsets = [2, 0], sizes = [2, 128], strides = [1, 1]} : vector<16x128xf32> to vector<2x128xf32>
    %cst_51 = arith.constant dense<0.000000e+00> : vector<2x128xf32>
    %204 = tpu.matmul %202, %177, %cst_51 {dimension_numbers = #tpu.dot_dimension_numbers<[1], [0], [0], [1], [0, 0, 1, 1], [], []>} : vector<2x32xf32>, vector<32x128xf32>, vector<2x128xf32> -> vector<2x128xf32>
    %205 = arith.addf %203, %204 : vector<2x128xf32>
    %206 = math.tanh %205 : vector<2x128xf32>
    %207 = arith.negf %205 : vector<2x128xf32>
    %208 = math.exp %207 : vector<2x128xf32>
    %cst_52 = arith.constant 1.000000e+00 : f32
    %209 = vector.broadcast %cst_52 : f32 to vector<2x128xf32>
    %210 = arith.addf %209, %208 : vector<2x128xf32>
    %211 = arith.divf %209, %210 : vector<2x128xf32>
    %212 = arith.select %5, %206, %211 : vector<2x128xi1>, vector<2x128xf32>
    %213 = vector.extract_strided_slice %212 {offsets = [0, 0], sizes = [2, 32], strides = [1, 1]} : vector<2x128xf32> to vector<2x32xf32>
    %214 = vector.extract_strided_slice %212 {offsets = [0, 32], sizes = [2, 32], strides = [1, 1]} : vector<2x128xf32> to vector<2x32xf32>
    %215 = vector.extract_strided_slice %212 {offsets = [0, 64], sizes = [2, 32], strides = [1, 1]} : vector<2x128xf32> to vector<2x32xf32>
    %216 = vector.extract_strided_slice %212 {offsets = [0, 96], sizes = [2, 32], strides = [1, 1]} : vector<2x128xf32> to vector<2x32xf32>
    %217 = arith.mulf %214, %200 : vector<2x32xf32>
    %218 = arith.mulf %213, %215 : vector<2x32xf32>
    %219 = arith.addf %217, %218 : vector<2x32xf32>
    %220 = math.tanh %219 : vector<2x32xf32>
    %221 = arith.mulf %216, %220 : vector<2x32xf32>
    %222 = vector.extract_strided_slice %181 {offsets = [4, 0], sizes = [2, 128], strides = [1, 1]} : vector<16x128xf32> to vector<2x128xf32>
    %cst_53 = arith.constant dense<0.000000e+00> : vector<2x128xf32>
    %223 = tpu.matmul %221, %177, %cst_53 {dimension_numbers = #tpu.dot_dimension_numbers<[1], [0], [0], [1], [0, 0, 1, 1], [], []>} : vector<2x32xf32>, vector<32x128xf32>, vector<2x128xf32> -> vector<2x128xf32>
    %224 = arith.addf %222, %223 : vector<2x128xf32>
    %225 = math.tanh %224 : vector<2x128xf32>
    %226 = arith.negf %224 : vector<2x128xf32>
    %227 = math.exp %226 : vector<2x128xf32>
    %cst_54 = arith.constant 1.000000e+00 : f32
    %228 = vector.broadcast %cst_54 : f32 to vector<2x128xf32>
    %229 = arith.addf %228, %227 : vector<2x128xf32>
    %230 = arith.divf %228, %229 : vector<2x128xf32>
    %231 = arith.select %5, %225, %230 : vector<2x128xi1>, vector<2x128xf32>
    %232 = vector.extract_strided_slice %231 {offsets = [0, 0], sizes = [2, 32], strides = [1, 1]} : vector<2x128xf32> to vector<2x32xf32>
    %233 = vector.extract_strided_slice %231 {offsets = [0, 32], sizes = [2, 32], strides = [1, 1]} : vector<2x128xf32> to vector<2x32xf32>
    %234 = vector.extract_strided_slice %231 {offsets = [0, 64], sizes = [2, 32], strides = [1, 1]} : vector<2x128xf32> to vector<2x32xf32>
    %235 = vector.extract_strided_slice %231 {offsets = [0, 96], sizes = [2, 32], strides = [1, 1]} : vector<2x128xf32> to vector<2x32xf32>
    %236 = arith.mulf %233, %219 : vector<2x32xf32>
    %237 = arith.mulf %232, %234 : vector<2x32xf32>
    %238 = arith.addf %236, %237 : vector<2x32xf32>
    %239 = math.tanh %238 : vector<2x32xf32>
    %240 = arith.mulf %235, %239 : vector<2x32xf32>
    %241 = vector.extract_strided_slice %181 {offsets = [6, 0], sizes = [2, 128], strides = [1, 1]} : vector<16x128xf32> to vector<2x128xf32>
    %cst_55 = arith.constant dense<0.000000e+00> : vector<2x128xf32>
    %242 = tpu.matmul %240, %177, %cst_55 {dimension_numbers = #tpu.dot_dimension_numbers<[1], [0], [0], [1], [0, 0, 1, 1], [], []>} : vector<2x32xf32>, vector<32x128xf32>, vector<2x128xf32> -> vector<2x128xf32>
    %243 = arith.addf %241, %242 : vector<2x128xf32>
    %244 = math.tanh %243 : vector<2x128xf32>
    %245 = arith.negf %243 : vector<2x128xf32>
    %246 = math.exp %245 : vector<2x128xf32>
    %cst_56 = arith.constant 1.000000e+00 : f32
    %247 = vector.broadcast %cst_56 : f32 to vector<2x128xf32>
    %248 = arith.addf %247, %246 : vector<2x128xf32>
    %249 = arith.divf %247, %248 : vector<2x128xf32>
    %250 = arith.select %5, %244, %249 : vector<2x128xi1>, vector<2x128xf32>
    %251 = vector.extract_strided_slice %250 {offsets = [0, 0], sizes = [2, 32], strides = [1, 1]} : vector<2x128xf32> to vector<2x32xf32>
    %252 = vector.extract_strided_slice %250 {offsets = [0, 32], sizes = [2, 32], strides = [1, 1]} : vector<2x128xf32> to vector<2x32xf32>
    %253 = vector.extract_strided_slice %250 {offsets = [0, 64], sizes = [2, 32], strides = [1, 1]} : vector<2x128xf32> to vector<2x32xf32>
    %254 = vector.extract_strided_slice %250 {offsets = [0, 96], sizes = [2, 32], strides = [1, 1]} : vector<2x128xf32> to vector<2x32xf32>
    %255 = arith.mulf %252, %238 : vector<2x32xf32>
    %256 = arith.mulf %251, %253 : vector<2x32xf32>
    %257 = arith.addf %255, %256 : vector<2x32xf32>
    %258 = math.tanh %257 : vector<2x32xf32>
    %259 = arith.mulf %254, %258 : vector<2x32xf32>
    %260 = vector.extract_strided_slice %181 {offsets = [8, 0], sizes = [2, 128], strides = [1, 1]} : vector<16x128xf32> to vector<2x128xf32>
    %cst_57 = arith.constant dense<0.000000e+00> : vector<2x128xf32>
    %261 = tpu.matmul %259, %177, %cst_57 {dimension_numbers = #tpu.dot_dimension_numbers<[1], [0], [0], [1], [0, 0, 1, 1], [], []>} : vector<2x32xf32>, vector<32x128xf32>, vector<2x128xf32> -> vector<2x128xf32>
    %262 = arith.addf %260, %261 : vector<2x128xf32>
    %263 = math.tanh %262 : vector<2x128xf32>
    %264 = arith.negf %262 : vector<2x128xf32>
    %265 = math.exp %264 : vector<2x128xf32>
    %cst_58 = arith.constant 1.000000e+00 : f32
    %266 = vector.broadcast %cst_58 : f32 to vector<2x128xf32>
    %267 = arith.addf %266, %265 : vector<2x128xf32>
    %268 = arith.divf %266, %267 : vector<2x128xf32>
    %269 = arith.select %5, %263, %268 : vector<2x128xi1>, vector<2x128xf32>
    %270 = vector.extract_strided_slice %269 {offsets = [0, 0], sizes = [2, 32], strides = [1, 1]} : vector<2x128xf32> to vector<2x32xf32>
    %271 = vector.extract_strided_slice %269 {offsets = [0, 32], sizes = [2, 32], strides = [1, 1]} : vector<2x128xf32> to vector<2x32xf32>
    %272 = vector.extract_strided_slice %269 {offsets = [0, 64], sizes = [2, 32], strides = [1, 1]} : vector<2x128xf32> to vector<2x32xf32>
    %273 = vector.extract_strided_slice %269 {offsets = [0, 96], sizes = [2, 32], strides = [1, 1]} : vector<2x128xf32> to vector<2x32xf32>
    %274 = arith.mulf %271, %257 : vector<2x32xf32>
    %275 = arith.mulf %270, %272 : vector<2x32xf32>
    %276 = arith.addf %274, %275 : vector<2x32xf32>
    %277 = math.tanh %276 : vector<2x32xf32>
    %278 = arith.mulf %273, %277 : vector<2x32xf32>
    %279 = vector.extract_strided_slice %181 {offsets = [10, 0], sizes = [2, 128], strides = [1, 1]} : vector<16x128xf32> to vector<2x128xf32>
    %cst_59 = arith.constant dense<0.000000e+00> : vector<2x128xf32>
    %280 = tpu.matmul %278, %177, %cst_59 {dimension_numbers = #tpu.dot_dimension_numbers<[1], [0], [0], [1], [0, 0, 1, 1], [], []>} : vector<2x32xf32>, vector<32x128xf32>, vector<2x128xf32> -> vector<2x128xf32>
    %281 = arith.addf %279, %280 : vector<2x128xf32>
    %282 = math.tanh %281 : vector<2x128xf32>
    %283 = arith.negf %281 : vector<2x128xf32>
    %284 = math.exp %283 : vector<2x128xf32>
    %cst_60 = arith.constant 1.000000e+00 : f32
    %285 = vector.broadcast %cst_60 : f32 to vector<2x128xf32>
    %286 = arith.addf %285, %284 : vector<2x128xf32>
    %287 = arith.divf %285, %286 : vector<2x128xf32>
    %288 = arith.select %5, %282, %287 : vector<2x128xi1>, vector<2x128xf32>
    %289 = vector.extract_strided_slice %288 {offsets = [0, 0], sizes = [2, 32], strides = [1, 1]} : vector<2x128xf32> to vector<2x32xf32>
    %290 = vector.extract_strided_slice %288 {offsets = [0, 32], sizes = [2, 32], strides = [1, 1]} : vector<2x128xf32> to vector<2x32xf32>
    %291 = vector.extract_strided_slice %288 {offsets = [0, 64], sizes = [2, 32], strides = [1, 1]} : vector<2x128xf32> to vector<2x32xf32>
    %292 = vector.extract_strided_slice %288 {offsets = [0, 96], sizes = [2, 32], strides = [1, 1]} : vector<2x128xf32> to vector<2x32xf32>
    %293 = arith.mulf %290, %276 : vector<2x32xf32>
    %294 = arith.mulf %289, %291 : vector<2x32xf32>
    %295 = arith.addf %293, %294 : vector<2x32xf32>
    %296 = math.tanh %295 : vector<2x32xf32>
    %297 = arith.mulf %292, %296 : vector<2x32xf32>
    %298 = vector.extract_strided_slice %181 {offsets = [12, 0], sizes = [2, 128], strides = [1, 1]} : vector<16x128xf32> to vector<2x128xf32>
    %cst_61 = arith.constant dense<0.000000e+00> : vector<2x128xf32>
    %299 = tpu.matmul %297, %177, %cst_61 {dimension_numbers = #tpu.dot_dimension_numbers<[1], [0], [0], [1], [0, 0, 1, 1], [], []>} : vector<2x32xf32>, vector<32x128xf32>, vector<2x128xf32> -> vector<2x128xf32>
    %300 = arith.addf %298, %299 : vector<2x128xf32>
    %301 = math.tanh %300 : vector<2x128xf32>
    %302 = arith.negf %300 : vector<2x128xf32>
    %303 = math.exp %302 : vector<2x128xf32>
    %cst_62 = arith.constant 1.000000e+00 : f32
    %304 = vector.broadcast %cst_62 : f32 to vector<2x128xf32>
    %305 = arith.addf %304, %303 : vector<2x128xf32>
    %306 = arith.divf %304, %305 : vector<2x128xf32>
    %307 = arith.select %5, %301, %306 : vector<2x128xi1>, vector<2x128xf32>
    %308 = vector.extract_strided_slice %307 {offsets = [0, 0], sizes = [2, 32], strides = [1, 1]} : vector<2x128xf32> to vector<2x32xf32>
    %309 = vector.extract_strided_slice %307 {offsets = [0, 32], sizes = [2, 32], strides = [1, 1]} : vector<2x128xf32> to vector<2x32xf32>
    %310 = vector.extract_strided_slice %307 {offsets = [0, 64], sizes = [2, 32], strides = [1, 1]} : vector<2x128xf32> to vector<2x32xf32>
    %311 = vector.extract_strided_slice %307 {offsets = [0, 96], sizes = [2, 32], strides = [1, 1]} : vector<2x128xf32> to vector<2x32xf32>
    %312 = arith.mulf %309, %295 : vector<2x32xf32>
    %313 = arith.mulf %308, %310 : vector<2x32xf32>
    %314 = arith.addf %312, %313 : vector<2x32xf32>
    %315 = math.tanh %314 : vector<2x32xf32>
    %316 = arith.mulf %311, %315 : vector<2x32xf32>
    %317 = vector.extract_strided_slice %181 {offsets = [14, 0], sizes = [2, 128], strides = [1, 1]} : vector<16x128xf32> to vector<2x128xf32>
    %cst_63 = arith.constant dense<0.000000e+00> : vector<2x128xf32>
    %318 = tpu.matmul %316, %177, %cst_63 {dimension_numbers = #tpu.dot_dimension_numbers<[1], [0], [0], [1], [0, 0, 1, 1], [], []>} : vector<2x32xf32>, vector<32x128xf32>, vector<2x128xf32> -> vector<2x128xf32>
    %319 = arith.addf %317, %318 : vector<2x128xf32>
    %320 = math.tanh %319 : vector<2x128xf32>
    %321 = arith.negf %319 : vector<2x128xf32>
    %322 = math.exp %321 : vector<2x128xf32>
    %cst_64 = arith.constant 1.000000e+00 : f32
    %323 = vector.broadcast %cst_64 : f32 to vector<2x128xf32>
    %324 = arith.addf %323, %322 : vector<2x128xf32>
    %325 = arith.divf %323, %324 : vector<2x128xf32>
    %326 = arith.select %5, %320, %325 : vector<2x128xi1>, vector<2x128xf32>
    %327 = vector.extract_strided_slice %326 {offsets = [0, 0], sizes = [2, 32], strides = [1, 1]} : vector<2x128xf32> to vector<2x32xf32>
    %328 = vector.extract_strided_slice %326 {offsets = [0, 32], sizes = [2, 32], strides = [1, 1]} : vector<2x128xf32> to vector<2x32xf32>
    %329 = vector.extract_strided_slice %326 {offsets = [0, 64], sizes = [2, 32], strides = [1, 1]} : vector<2x128xf32> to vector<2x32xf32>
    %330 = vector.extract_strided_slice %326 {offsets = [0, 96], sizes = [2, 32], strides = [1, 1]} : vector<2x128xf32> to vector<2x32xf32>
    %331 = arith.mulf %328, %314 : vector<2x32xf32>
    %332 = arith.mulf %327, %329 : vector<2x32xf32>
    %333 = arith.addf %331, %332 : vector<2x32xf32>
    %334 = math.tanh %333 : vector<2x32xf32>
    %335 = arith.mulf %330, %334 : vector<2x32xf32>
    %336 = vector.extract_strided_slice %335 {offsets = [0, 0], sizes = [1, 32], strides = [1, 1]} : vector<2x32xf32> to vector<1x32xf32>
    %337 = vector.extract_strided_slice %335 {offsets = [1, 0], sizes = [1, 32], strides = [1, 1]} : vector<2x32xf32> to vector<1x32xf32>
    %338 = arith.subf %336, %337 : vector<1x32xf32>
    %339 = math.absf %338 : vector<1x32xf32>
    %cst_65 = arith.constant dense<0.000000e+00> : vector<1xf32>
    %340 = vector.multi_reduction <add>, %339, %cst_65 [1] : vector<1x32xf32> to vector<1xf32>
    %341 = vector.shape_cast %340 : vector<1xf32> to vector<1x1xf32>
    %cst_66 = arith.constant 0.000000e+00 : f32
    %342 = vector.broadcast %cst_66 : f32 to vector<1x1xf32>
    %343 = arith.subf %342, %341 : vector<1x1xf32>
    %344 = math.exp %343 : vector<1x1xf32>
    %cst_67 = arith.constant 5.000000e+00 : f32
    %345 = vector.broadcast %cst_67 : f32 to vector<1x1xf32>
    %346 = arith.mulf %345, %344 : vector<1x1xf32>
    %347 = vector.shape_cast %346 : vector<1x1xf32> to vector<1x1xf32>
    %348 = vector.broadcast %347 : vector<1x1xf32> to vector<1x128xf32>
    %c0_68 = arith.constant 0 : index
    %c0_69 = arith.constant 0 : index
    %349 = vector.load %arg9[%c0_68, %c0_69] : memref<1x128xf32, #tpu.memory_space<vmem>>, vector<1x128xf32>
    tpu.vector_store %arg9[%c0_68, %c0_69], %348 {strides = array<i32>} : memref<1x128xf32, #tpu.memory_space<vmem>>, vector<1x128xf32>,
    return
  }
}

</mosaic_0001>

<bundles_post_ra>
// kernel: tpu_custom_call.1
= control target key start
LH: loop header
LB: loop body
LE: loop exit
PB: predicated region body
PF: predicated region fallthrough
CT: control target
= control target key end

     0   :  { %14 = vsyncpa [#allocation4], 0  ;;  %s3298_s0 = inlined_call_operand.hbm [shape: f32[16,32], index: 0, kind: input, shape index: {}]   ;;  %s3299_s1 = inlined_call_operand.hbm [shape: f32[4,32], index: 1, kind: input, shape index: {}]   ;;  %s3300_s2 = inlined_call_operand.vmem [shape: f32[4,32], index: 2, kind: input, shape index: {}]   ;;  %s3301_s3 = inlined_call_operand.hbm [shape: f32[32,128], index: 3, kind: input, shape index: {}]   ;;  %s3302_s4 = inlined_call_operand.hbm [shape: f32[32,128], index: 4, kind: input, shape index: {}]   ;;  %s3303_s5 = inlined_call_operand.vmem [shape: f32[1,128], index: 5, kind: input, shape index: {}]   ;;  %s3304_s6 = inlined_call_operand.hbm [shape: f32[32,128], index: 6, kind: input, shape index: {}]   ;;  %s3305_s7 = inlined_call_operand.hbm [shape: f32[32,128], index: 7, kind: input, shape index: {}]   ;;  %s3306_s8 = inlined_call_operand.vmem [shape: f32[1,128], index: 8, kind: input, shape index: {}]   ;;  %s3307_s9 = inlined_call_operand.hbm [shape: f32[1,128], index: 9, kind: output, shape index: {}]  }
   0x1   :  { %15 = vsyncpa [#allocation7], 0 }
   0x2   :  { %16 = vsyncpa [#allocation10], 0 }
   0x3   :  { %17 = vsyncpa [#allocation13], 0 }
   0x4   :  { %18 = vsyncpa [#allocation5], 0  ;;  %s2844_s30 = smov [#allocation6]   ;;  %s2680_s13 = scalar_lea.hbm %s3299_s1, 64 }
   0x5   :  { %s37_s10 = sshll.u32 %s2844_s30, 4  ;;  %p2681_p0 = scmp.ne.s32.totalorder %s3299_s1, %s2680_s13  ;;  %s38_s10 = int_to_ptr.vmem [resolvable:$true] %s37_s10 }
   0x6   :  { %p2684_p1 = scmp.lt.u32.totalorder %s2680_s13, %s3299_s1 }
   0x8   :  { %p2686_p2 = pnand %p2684_p1, %p2681_p0 }
   0xa   :  { %2689 = shalt.err (!%p2686_p2)
}
   0xb   :  { %s2690_s18 = scalar_lea.vmem %s38_s10, 64  ;;  %p2695_p4 = scmp.lt.s32.totalorder %s38_s10, %s38_s10 }
   0xc   :  { %p2691_p3 = scmp.ne.s32.totalorder %s38_s10, %s2690_s18  ;;  %p2696_p5 = scmp.lt.s32.totalorder %s2690_s18, %s2690_s18 }
   0xe   :  { %p2697_p6 = por %p2696_p5, %p2695_p4 }
  0x10   :  { %p2698_p7 = pnand %p2697_p6, %p2691_p3 }
  0x12   :  { %2701 = shalt.err (!%p2698_p7)
}
  0x13   :  { %40 = dma.hbm_to_vmem [thread:$0]  %s3299_s1, 64, %s38_s10, [#allocation7]  }
  0x14   :  { %s2845_s21 = smov [#allocation9]   ;;  %s2846_s23 = smov [#allocation3]  }
  0x15   :  { %s60_s22 = sshll.u32 %s2845_s21, 4  ;;  %s24_s24 = sshll.u32 %s2846_s23, 4  ;;  %s61_s22 = int_to_ptr.vmem [resolvable:$true] %s60_s22  ;;  %s25_s24 = int_to_ptr.vmem [resolvable:$true] %s24_s24 }
  0x16   :  { %s2702_s27 = scalar_lea.hbm %s3302_s4, 512 }
  0x17   :  { %p2703_p8 = scmp.ne.s32.totalorder %s3302_s4, %s2702_s27  ;;  %p2706_p9 = scmp.lt.u32.totalorder %s2702_s27, %s3302_s4 }
  0x19   :  { %p2708_p10 = pnand %p2706_p9, %p2703_p8 }
  0x1b   :  { %2711 = shalt.err (!%p2708_p10)
}
  0x1c   :  { %s2712_s1 = scalar_lea.vmem %s61_s22, 512  ;;  %p2717_p12 = scmp.lt.s32.totalorder %s61_s22, %s61_s22 }
  0x1d   :  { %p2713_p11 = scmp.ne.s32.totalorder %s61_s22, %s2712_s1  ;;  %p2718_p13 = scmp.lt.s32.totalorder %s2712_s1, %s2712_s1 }
  0x1f   :  { %p2719_p0 = por %p2718_p13, %p2717_p12 }
  0x21   :  { %p2720_p1 = pnand %p2719_p0, %p2713_p11 }
  0x23   :  { %2723 = shalt.err (!%p2720_p1)
}
  0x24   :  { %s2847_s10 = smov 128   ;;  %s2848_s12 = smov 8  }
  0x25   :  { %66 = dma.hbm_to_vmem [thread:$0]  %s3302_s4, 512, %s61_s22, [#allocation10], %s2847_s10, %s2847_s10, %s2848_s12  }
  0x26   :  { %s2724_s17 = scalar_lea.hbm %s3298_s0, 256 }
  0x27   :  { %p2725_p2 = scmp.ne.s32.totalorder %s3298_s0, %s2724_s17  ;;  %p2728_p3 = scmp.lt.u32.totalorder %s2724_s17, %s3298_s0 }
  0x29   :  { %p2730_p4 = pnand %p2728_p3, %p2725_p2 }
  0x2b   :  { %2733 = shalt.err (!%p2730_p4)
}
  0x2c   :  { %s2734_s23 = scalar_lea.vmem %s25_s24, 256  ;;  %p2739_p6 = scmp.lt.s32.totalorder %s25_s24, %s25_s24 }
  0x2d   :  { %p2735_p5 = scmp.ne.s32.totalorder %s25_s24, %s2734_s23  ;;  %p2740_p7 = scmp.lt.s32.totalorder %s2734_s23, %s2734_s23 }
  0x2f   :  { %p2741_p8 = por %p2740_p7, %p2739_p6 }
  0x31   :  { %p2742_p9 = pnand %p2741_p8, %p2735_p5 }
  0x33   :  { %2745 = shalt.err (!%p2742_p9)
}
  0x34   :  { %30 = dma.hbm_to_vmem [thread:$0]  %s3298_s0, 256, %s25_s24, [#allocation4], %s2847_s10, %s2847_s10, %s2848_s12  }
  0x35   :  { %s2849_s25 = smov [#allocation8]   ;;  %s2850_s27 = smov [#allocation11]  }
  0x36   :  { %s48_s26 = sshll.u32 %s2849_s25, 4  ;;  %s74_s28 = sshll.u32 %s2850_s27, 4  ;;  %s49_s26 = int_to_ptr.vmem [resolvable:$true] %s48_s26  ;;  %s75_s28 = int_to_ptr.vmem [resolvable:$true] %s74_s28 }
  0x37   :  { %s2746_s11 = scalar_lea.hbm %s3301_s3, 512 }
  0x38   :  { %p2747_p10 = scmp.ne.s32.totalorder %s3301_s3, %s2746_s11  ;;  %p2750_p11 = scmp.lt.u32.totalorder %s2746_s11, %s3301_s3 }
  0x3a   :  { %p2752_p12 = pnand %p2750_p11, %p2747_p10 }
  0x3c   :  { %2755 = shalt.err (!%p2752_p12)
}
  0x3d   :  { %s2756_s0 = scalar_lea.vmem %s49_s26, 512  ;;  %p2761_p0 = scmp.lt.s32.totalorder %s49_s26, %s49_s26 }
  0x3e   :  { %p2757_p13 = scmp.ne.s32.totalorder %s49_s26, %s2756_s0  ;;  %p2762_p1 = scmp.lt.s32.totalorder %s2756_s0, %s2756_s0 }
  0x40   :  { %p2763_p2 = por %p2762_p1, %p2761_p0 }
  0x42   :  { %p2764_p3 = pnand %p2763_p2, %p2757_p13 }
  0x44   :  { %2767 = shalt.err (!%p2764_p3)
}
  0x45   :  { %54 = dma.hbm_to_vmem [thread:$0]  %s3301_s3, 512, %s49_s26, [#allocation7], %s2847_s10, %s2847_s10, %s2848_s12  }
  0x46   :  { %s2768_s19 = scalar_lea.hbm %s3304_s6, 512 }
  0x47   :  { %p2769_p4 = scmp.ne.s32.totalorder %s3304_s6, %s2768_s19  ;;  %p2772_p5 = scmp.lt.u32.totalorder %s2768_s19, %s3304_s6 }
  0x49   :  { %p2774_p6 = pnand %p2772_p5, %p2769_p4 }
  0x4b   :  { %2777 = shalt.err (!%p2774_p6)
}
  0x4c   :  { %s2778_s22 = scalar_lea.vmem %s75_s28, 512  ;;  %p2783_p8 = scmp.lt.s32.totalorder %s75_s28, %s75_s28 }
  0x4d   :  { %p2779_p7 = scmp.ne.s32.totalorder %s75_s28, %s2778_s22  ;;  %p2784_p9 = scmp.lt.s32.totalorder %s2778_s22, %s2778_s22 }
  0x4f   :  { %p2785_p10 = por %p2784_p9, %p2783_p8 }
  0x51   :  { %p2786_p11 = pnand %p2785_p10, %p2779_p7 }
  0x53   :  { %2789 = shalt.err (!%p2786_p11)
}
  0x54   :  { %80 = dma.hbm_to_vmem [thread:$0]  %s3304_s6, 512, %s75_s28, [#allocation10], %s2847_s10, %s2847_s10, %s2848_s12  }
  0x55   :  { %s2851_s26 = smov [#allocation12]   ;;  %s2790_s11 = scalar_lea.hbm %s3305_s7, 512 }
  0x56   :  { %s86_s27 = sshll.u32 %s2851_s26, 4  ;;  %p2791_p12 = scmp.ne.s32.totalorder %s3305_s7, %s2790_s11  ;;  %s87_s27 = int_to_ptr.vmem [resolvable:$true] %s86_s27 }
  0x57   :  { %p2794_p13 = scmp.lt.u32.totalorder %s2790_s11, %s3305_s7 }
  0x59   :  { %p2796_p0 = pnand %p2794_p13, %p2791_p12 }
  0x5b   :  { %2799 = shalt.err (!%p2796_p0)
}
  0x5c   :  { %s2800_s0 = scalar_lea.vmem %s87_s27, 512  ;;  %p2805_p2 = scmp.lt.s32.totalorder %s87_s27, %s87_s27 }
  0x5d   :  { %p2801_p1 = scmp.ne.s32.totalorder %s87_s27, %s2800_s0  ;;  %p2806_p3 = scmp.lt.s32.totalorder %s2800_s0, %s2800_s0 }
  0x5f   :  { %p2807_p4 = por %p2806_p3, %p2805_p2 }
  0x61   :  { %p2808_p5 = pnand %p2807_p4, %p2801_p1 }
  0x63   :  { %2811 = shalt.err (!%p2808_p5)
}
  0x64   :  { %92 = dma.hbm_to_vmem [thread:$0]  %s3305_s7, 512, %s87_s27, [#allocation13], %s2847_s10, %s2847_s10, %s2848_s12  }
  0x65   :  { %2834 = dma.done.wait [#allocation4], 256  }
  0x66   :  { %2835 = vsyncadd [#allocation4], 4294967040 }
  0x67   :  { %2836 = dma.done.wait [#allocation7], 576  }
  0x68   :  { %2837 = vsyncadd [#allocation7], 4294966720 }
  0x69   :  { %2838 = dma.done.wait [#allocation10], 1024  }
  0x6a   :  { %2839 = vsyncadd [#allocation10], 4294966272 }
  0x6b   :  { %2840 = dma.done.wait [#allocation13], 512  }
  0x6c   :  { %2841 = vsyncadd [#allocation13], 4294966784  ;;  %v2852_v0 = vmov 0.0|0.0   ;;  %vm2853_vm0 = vmmov 0   ;;  %v2854_v1 = vmov 0.0   ;;  %v120_v2 = vld [vmem:[#allocation8] sm:$0xff]  ;;  %v113_v27 = vlaneseq }
  0x6d   :  { %2432 = vmatprep.subr.bf16.mxu1 %v2852_v0  ;;  %2245 = vmatprep.mubr.msk.f32.mxu1 %vm2853_vm0, %v2854_v1  ;;  %v121_v3 = vld [vmem:[#allocation8 + $0x8] sm:$0xff]  ;;  %v124_v4 = vld [vmem:[#allocation9] sm:$0xff]  ;;  %vm135_vm1 = vcmask 261120   ;;  %v122_v7 = vld [vmem:[#allocation8 + $0x10] sm:$0xff]  ;;  %s2856_s16 = smov 32   ;;  %vm326_vm5 = vcmask 254976  }
  0x6e   :  { %v2424_v5 = vpack.c.bf16 %v121_v3, %v120_v2  ;;  %v125_v6 = vld [vmem:[#allocation9 + $0x8] sm:$0xff]  ;;  %v123_v8 = vld [vmem:[#allocation8 + $0x18] sm:$0xff]  ;;  %v126_v12 = vld [vmem:[#allocation9 + $0x10] sm:$0xff]  ;;  %v114_v29 = vand.u32 127, %v113_v27  ;;  %vm436_vm6 = vcmask 257026   ;;  %vm662_vm7 = vcmask 261126  }
  0x6f   :  { %v2998_v9 = vpack.c.bf16 %v125_v6, %v124_v4  ;;  %v2428_v10 = vpack.c.bf16 %v123_v8, %v122_v7  ;;  %v118_v11 = vld [vmem:[#allocation3] sm:$0xff]  ;;  %v127_v13 = vld [vmem:[#allocation9 + $0x18] sm:$0xff]  ;;  %vm549_vm8 = vcmask 259076   ;;  %vm2069_vm9 = vcmask 260102  }
  0x70   :  { %2425 = vmatprep.subr.bf16.mxu0 %v2424_v5  ;;  %2234 = vmatprep.mubr.msk.f32.mxu0 %vm135_vm1, %v118_v11  ;;  %v3002_v14 = vpack.c.bf16 %v127_v13, %v126_v12  ;;  %v119_v15 = vld [vmem:[#allocation3 + $0x8] sm:$0xff]  ;;  %v217_v16 = vld [vmem:[#allocation6] sm:$0x3]  ;;  %vm115_vm2 = vcmp.ge.s32.totalorder %v114_v29, 64  ;;  %vm116_vm3 = vcmp.lt.s32.totalorder %v114_v29, 96 }
  0x71   :  { %2427 = vmatpush3.bf16.msra.mxu0 %v2424_v5  ;;  %2434 = vmatpush3.bf16.msra.mxu1 %v2998_v9  ;;  %v2096_v17 = vld [vmem:[%s3303_s5] ss:$0 sm:$0xff]  ;;  %vm3030_vm4 = vmand %vm115_vm2, %vm116_vm3  ;;  %s2855_s5 = smov 64  }
  0x72   :  { %2429 = vmatprep.subr.bf16.mxu0 %v2428_v10  ;;  %2435 = vmatprep.subr.bf16.mxu1 %v2852_v0  ;;  %v218_v34 = vld [vmem:[%s3300_s2] sm:$0x3] }
  0x75   :  { %2431 = vmatpush3.bf16.msra.mxu0 %v2428_v10  ;;  %2437 = vmatpush3.bf16.msra.mxu1 %v3002_v14 }
  0x76   :  { %2438 = vmatprep.subr.bf16.mxu0 %v2852_v0  ;;  %2444 = vmatprep.subr.bf16.mxu1 %v2852_v0 }
  0x78   :  { %2235 = vmatmul.mubr.msk.f32.vlgmr.msra.gmra.mrb[0].mxu0 %vm135_vm1, %v119_v15  ;;  %2246 = vmatmul.mubr.msk.f32.vlgmr.msra.gmra.mrb[0].mxu1 %vm135_vm1, %v217_v16 }
  0x79   :  { %2440 = vmatpush3.bf16.msra.mxu0 %v2998_v9  ;;  %2256 = vmatprep.mubr.msk.f32.mxu0 %vm2853_vm0, %v2854_v1 }
  0x7a   :  { %2441 = vmatprep.subr.bf16.mxu0 %v2852_v0  ;;  %2446 = vmatpush3.bf16.msra.mxu1 %v2998_v9 }
  0x7b   :  { %2447 = vmatprep.subr.bf16.mxu1 %v2852_v0  ;;  %2267 = vmatprep.mubr.msk.f32.mxu1 %vm2853_vm0, %v2854_v1 }
  0x7d   :  { %2443 = vmatpush3.bf16.msra.mxu0 %v3002_v14 }
  0x7e   :  { %2449 = vmatpush3.bf16.msra.mxu1 %v3002_v14  ;;  %2450 = vmatprep.subr.bf16.mxu0 %v2852_v0 }
  0x7f   :  { %2456 = vmatprep.subr.bf16.mxu1 %v2852_v0 }
 0x14b   :  { %v2236_v18 = vpop.f32.mrb[0].mxu0  ;;  %v288_v19 = vpop.f32.mrb[0].mxu1 }
 0x14c   :  { %v3025_v20 = vadd.f32 %v2236_v18, %v2096_v17  ;;  %v208_v21 = vpop.f32.mrb[1].mxu0  ;;  %v2247_v22 = vpop.f32.mrb[1].mxu1 }
 0x14d   :  { %v3027_v23 = vadd.f32 %v2096_v17, %v208_v21 }
 0x14f   :  { %v292_v24 = vadd.f32 %v288_v19, %v3027_v23 }
 0x151   :  { %v2100_v25 = vmul.f32 -1.442695, %v292_v24 }
 0x153   :  { %2550 = vpow2.f32 %v2100_v25 }
 0x154   :  { %2552 = vtanh.f32 %v292_v24 }
 0x15d   :  { %v2551_v26 = vpop.eup %2550 }
 0x15e   :  { %v297_v28 = vadd.f32 1.0, %v2551_v26  ;;  %v2553_v31 = vpop.eup %2552 }
 0x160   :  { %2554 = vrcp.f32 %v297_v28 }
 0x16a   :  { %v2555_v32 = vpop.eup %2554 }
 0x16b   :  { %v300_v33 = vsel %vm3030_vm4, %v2553_v31, %v2555_v32 }
 0x16c   :  { %307 = vrot.lane.b32.xlu0 %v300_v33, %s2855_s5 }
 0x170   :  { %302 = vrot.lane.b32.xlu0 %v218_v34, %s2856_s16 }
 0x1de   :  { %v308_v35 = vpop.permute.xlu0 %307 }
 0x1df   :  { %v310_v36 = vmul.f32 %v308_v35, %v300_v33 }
 0x1e1   :  { %312 = vrot.lane.b32.xlu1 %v310_v36, %s2856_s16 }
 0x1e2   :  { %v303_v37 = vpop.permute.xlu0 %302 }
 0x1e3   :  { %v305_v38 = vmul.f32 %v303_v37, %v300_v33 }
 0x253   :  { %v313_v39 = vpop.permute.xlu1 %312 }
 0x254   :  { %v315_v40 = vadd.f32 %v313_v39, %v305_v38 }
 0x256   :  { %2556 = vtanh.f32 %v315_v40  ;;  %v413_v57 = vrot.slane %v315_v40, 6 }
 0x260   :  { %v2557_v41 = vpop.eup %2556 }
 0x261   :  { %318 = vrot.lane.b32.xlu1 %v2557_v41, %s2855_s5 }
 0x2d3   :  { %v319_v42 = vpop.permute.xlu1 %318 }
 0x2d4   :  { %v321_v43 = vmul.f32 %v319_v42, %v300_v33 }
 0x2d6   :  { %323 = vrot.lane.b32.xlu0 %v321_v43, %s2856_s16 }
 0x348   :  { %v324_v44 = vpop.permute.xlu0 %323 }
 0x349   :  { %327 = vst.msk [vmem:[#allocation2] sm:$0x3] %vm326_vm5, %v324_v44  ;;  %2257 = vmatmul.mubr.msk.f32.vlgmr.msra.gmra.mrb[2].mxu0 %vm135_vm1, %v324_v44 }
 0x34a   :  { %2452 = vmatpush3.bf16.msra.mxu0 %v2998_v9  ;;  %2278 = vmatprep.mubr.msk.f32.mxu0 %vm2853_vm0, %v2854_v1 }
 0x34b   :  { %2453 = vmatprep.subr.bf16.mxu0 %v2852_v0 }
 0x34e   :  { %2455 = vmatpush3.bf16.msra.mxu0 %v3002_v14 }
 0x34f   :  { %2462 = vmatprep.subr.bf16.mxu0 %v2852_v0 }
 0x41c   :  { %v396_v45 = vpop.f32.mrb[2].mxu0 }
 0x41d   :  { %v401_v46 = vrot.slane %v396_v45, 6  ;;  %v2258_v47 = vpop.f32.mrb[3].mxu0 }
 0x41f   :  { %v403_v48 = vadd.f32 %v401_v46, %v3027_v23 }
 0x421   :  { %v2102_v49 = vmul.f32 -1.442695, %v403_v48 }
 0x423   :  { %2558 = vpow2.f32 %v2102_v49 }
 0x424   :  { %2560 = vtanh.f32 %v403_v48 }
 0x42d   :  { %v2559_v50 = vpop.eup %2558 }
 0x42e   :  { %v408_v51 = vadd.f32 1.0, %v2559_v50  ;;  %v2561_v52 = vpop.eup %2560 }
 0x430   :  { %2562 = vrcp.f32 %v408_v51 }
 0x43a   :  { %v2563_v53 = vpop.eup %2562 }
 0x43b   :  { %v411_v54 = vsel %vm3030_vm4, %v2561_v52, %v2563_v53 }
 0x43c   :  { %417 = vrot.lane.b32.xlu1 %v411_v54, %s2855_s5  ;;  %v415_v58 = vmul.f32 %v413_v57, %v411_v54 }
 0x4ae   :  { %v418_v55 = vpop.permute.xlu1 %417 }
 0x4af   :  { %v420_v56 = vmul.f32 %v418_v55, %v411_v54 }
 0x4b1   :  { %422 = vrot.lane.b32.xlu0 %v420_v56, %s2856_s16 }
 0x523   :  { %v423_v59 = vpop.permute.xlu0 %422 }
 0x524   :  { %v425_v60 = vadd.f32 %v423_v59, %v415_v58 }
 0x526   :  { %2564 = vtanh.f32 %v425_v60  ;;  %v526_v18 = vrot.slane %v425_v60, 6 }
 0x530   :  { %v2565_v61 = vpop.eup %2564 }
 0x531   :  { %428 = vrot.lane.b32.xlu1 %v2565_v61, %s2855_s5 }
 0x5a3   :  { %v429_v62 = vpop.permute.xlu1 %428 }
 0x5a4   :  { %v3058_v63 = vmul.f32 %v429_v62, %v411_v54 }
 0x5a6   :  { %v438_v2 = vrot.slane %v3058_v63, 2 }
 0x5a8   :  { %439 = vrot.lane.b32.xlu0 %v438_v2, %s2856_s16 }
 0x61a   :  { %v440_v3 = vpop.permute.xlu0 %439 }
 0x61b   :  { %2268 = vmatmul.mubr.msk.f32.vlgmr.msra.gmra.mrb[2].mxu1 %vm135_vm1, %v440_v3 }
 0x61c   :  { %2458 = vmatpush3.bf16.msra.mxu1 %v2998_v9  ;;  %2289 = vmatprep.mubr.msk.f32.mxu1 %vm2853_vm0, %v2854_v1 }
 0x61d   :  { %2459 = vmatprep.subr.bf16.mxu1 %v2852_v0 }
 0x620   :  { %2461 = vmatpush3.bf16.msra.mxu1 %v3002_v14 }
 0x621   :  { %2468 = vmatprep.subr.bf16.mxu1 %v2852_v0 }
 0x6ee   :  { %v509_v4 = vpop.f32.mrb[2].mxu1 }
 0x6ef   :  { %v514_v5 = vrot.slane %v509_v4, 4  ;;  %v2269_v6 = vpop.f32.mrb[3].mxu1 }
 0x6f1   :  { %v516_v7 = vadd.f32 %v514_v5, %v3027_v23 }
 0x6f3   :  { %v2104_v8 = vmul.f32 -1.442695, %v516_v7 }
 0x6f5   :  { %2566 = vpow2.f32 %v2104_v8 }
 0x6f6   :  { %2568 = vtanh.f32 %v516_v7 }
 0x6ff   :  { %v2567_v10 = vpop.eup %2566 }
 0x700   :  { %v521_v11 = vadd.f32 1.0, %v2567_v10  ;;  %v2569_v12 = vpop.eup %2568 }
 0x702   :  { %2570 = vrcp.f32 %v521_v11 }
 0x70c   :  { %v2571_v13 = vpop.eup %2570 }
 0x70d   :  { %v524_v15 = vsel %vm3030_vm4, %v2569_v12, %v2571_v13 }
 0x70e   :  { %530 = vrot.lane.b32.xlu1 %v524_v15, %s2855_s5  ;;  %v528_v19 = vmul.f32 %v526_v18, %v524_v15 }
 0x780   :  { %v531_v16 = vpop.permute.xlu1 %530 }
 0x781   :  { %v533_v17 = vmul.f32 %v531_v16, %v524_v15 }
 0x783   :  { %535 = vrot.lane.b32.xlu0 %v533_v17, %s2856_s16 }
 0x7f5   :  { %v536_v21 = vpop.permute.xlu0 %535 }
 0x7f6   :  { %v538_v22 = vadd.f32 %v536_v21, %v528_v19 }
 0x7f8   :  { %2572 = vtanh.f32 %v538_v22  ;;  %v639_v42 = vrot.slane %v538_v22, 6 }
 0x802   :  { %v2573_v24 = vpop.eup %2572 }
 0x803   :  { %541 = vrot.lane.b32.xlu1 %v2573_v24, %s2855_s5 }
 0x875   :  { %v542_v25 = vpop.permute.xlu1 %541 }
 0x876   :  { %v3075_v26 = vmul.f32 %v542_v25, %v524_v15 }
 0x878   :  { %v551_v27 = vrot.slane %v3075_v26, 4 }
 0x87a   :  { %552 = vrot.lane.b32.xlu0 %v551_v27, %s2856_s16 }
 0x8ec   :  { %v553_v28 = vpop.permute.xlu0 %552 }
 0x8ed   :  { %2279 = vmatmul.mubr.msk.f32.vlgmr.msra.gmra.mrb[4].mxu0 %vm135_vm1, %v553_v28 }
 0x8ee   :  { %2464 = vmatpush3.bf16.msra.mxu0 %v2998_v9  ;;  %2300 = vmatprep.mubr.msk.f32.mxu0 %vm2853_vm0, %v2854_v1 }
 0x8ef   :  { %2465 = vmatprep.subr.bf16.mxu0 %v2852_v0 }
 0x8f2   :  { %2467 = vmatpush3.bf16.msra.mxu0 %v3002_v14 }
 0x8f3   :  { %2474 = vmatprep.subr.bf16.mxu0 %v2852_v0 }
 0x9c0   :  { %v622_v29 = vpop.f32.mrb[4].mxu0 }
 0x9c1   :  { %v627_v31 = vrot.slane %v622_v29, 2  ;;  %v2280_v32 = vpop.f32.mrb[5].mxu0 }
 0x9c3   :  { %v629_v33 = vadd.f32 %v627_v31, %v3027_v23 }
 0x9c5   :  { %v2106_v34 = vmul.f32 -1.442695, %v629_v33 }
 0x9c7   :  { %2574 = vpow2.f32 %v2106_v34 }
 0x9c8   :  { %2576 = vtanh.f32 %v629_v33 }
 0x9d1   :  { %v2575_v35 = vpop.eup %2574 }
 0x9d2   :  { %v634_v36 = vadd.f32 1.0, %v2575_v35  ;;  %v2577_v37 = vpop.eup %2576 }
 0x9d4   :  { %2578 = vrcp.f32 %v634_v36 }
 0x9de   :  { %v2579_v38 = vpop.eup %2578 }
 0x9df   :  { %v637_v39 = vsel %vm3030_vm4, %v2577_v37, %v2579_v38 }
 0x9e0   :  { %643 = vrot.lane.b32.xlu1 %v637_v39, %s2855_s5  ;;  %v641_v43 = vmul.f32 %v639_v42, %v637_v39 }
 0xa52   :  { %v644_v40 = vpop.permute.xlu1 %643 }
 0xa53   :  { %v646_v41 = vmul.f32 %v644_v40, %v637_v39 }
 0xa55   :  { %648 = vrot.lane.b32.xlu0 %v646_v41, %s2856_s16 }
 0xac7   :  { %v649_v23 = vpop.permute.xlu0 %648 }
 0xac8   :  { %v651_v44 = vadd.f32 %v649_v23, %v641_v43 }
 0xaca   :  { %2580 = vtanh.f32 %v651_v44  ;;  %v749_v61 = vrot.slane %v651_v44, 6 }
 0xad4   :  { %v2581_v45 = vpop.eup %2580 }
 0xad5   :  { %654 = vrot.lane.b32.xlu1 %v2581_v45, %s2855_s5 }
 0xb47   :  { %v655_v46 = vpop.permute.xlu1 %654 }
 0xb48   :  { %v3092_v47 = vmul.f32 %v655_v46, %v637_v39 }
 0xb4a   :  { %v664_v48 = vrot.slane %v3092_v47, 6 }
 0xb4c   :  { %665 = vrot.lane.b32.xlu0 %v664_v48, %s2856_s16 }
 0xbbe   :  { %v666_v49 = vpop.permute.xlu0 %665 }
 0xbbf   :  { %2290 = vmatmul.mubr.msk.f32.vlgmr.msra.gmra.mrb[4].mxu1 %vm135_vm1, %v666_v49 }
 0xbc0   :  { %2470 = vmatpush3.bf16.msra.mxu1 %v2998_v9  ;;  %2311 = vmatprep.mubr.msk.f32.mxu1 %vm2853_vm0, %v2854_v1 }
 0xbc1   :  { %2471 = vmatprep.subr.bf16.mxu1 %v2852_v0 }
 0xbc4   :  { %2473 = vmatpush3.bf16.msra.mxu1 %v3002_v14 }
 0xc92   :  { %v735_v50 = vpop.f32.mrb[4].mxu1 }
 0xc93   :  { %v739_v51 = vadd.f32 %v735_v50, %v3025_v20  ;;  %v2291_v52 = vpop.f32.mrb[5].mxu1 }
 0xc95   :  { %v2108_v53 = vmul.f32 -1.442695, %v739_v51 }
 0xc97   :  { %2582 = vpow2.f32 %v2108_v53 }
 0xc98   :  { %2584 = vtanh.f32 %v739_v51 }
 0xca1   :  { %v2583_v54 = vpop.eup %2582 }
 0xca2   :  { %v744_v55 = vadd.f32 1.0, %v2583_v54  ;;  %v2585_v56 = vpop.eup %2584 }
 0xca4   :  { %2586 = vrcp.f32 %v744_v55 }
 0xcae   :  { %v2587_v57 = vpop.eup %2586 }
 0xcaf   :  { %v747_v58 = vsel %vm3030_vm4, %v2585_v56, %v2587_v57 }
 0xcb0   :  { %753 = vrot.lane.b32.xlu1 %v747_v58, %s2855_s5  ;;  %v751_v62 = vmul.f32 %v749_v61, %v747_v58 }
 0xd22   :  { %v754_v59 = vpop.permute.xlu1 %753 }
 0xd23   :  { %v756_v60 = vmul.f32 %v754_v59, %v747_v58 }
 0xd25   :  { %758 = vrot.lane.b32.xlu0 %v756_v60, %s2856_s16 }
 0xd97   :  { %v759_v2 = vpop.permute.xlu0 %758 }
 0xd98   :  { %v761_v3 = vadd.f32 %v759_v2, %v751_v62 }
 0xd9a   :  { %2588 = vtanh.f32 %v761_v3  ;;  %v858_v21 = vrot.slane %v761_v3, 6 }
 0xda4   :  { %v2589_v4 = vpop.eup %2588 }
 0xda5   :  { %764 = vrot.lane.b32.xlu1 %v2589_v4, %s2855_s5 }
 0xe17   :  { %v765_v5 = vpop.permute.xlu1 %764 }
 0xe18   :  { %v767_v6 = vmul.f32 %v765_v5, %v747_v58 }
 0xe1a   :  { %769 = vrot.lane.b32.xlu0 %v767_v6, %s2856_s16 }
 0xe8c   :  { %v770_v7 = vpop.permute.xlu0 %769 }
 0xe8d   :  { %772 = vst.msk [vmem:[#allocation2 + $0x8] sm:$0x3] %vm326_vm5, %v770_v7  ;;  %2301 = vmatmul.mubr.msk.f32.vlgmr.msra.gmra.mrb[6].mxu0 %vm135_vm1, %v770_v7 }
 0xe8e   :  { %2476 = vmatpush3.bf16.msra.mxu0 %v2998_v9  ;;  %2322 = vmatprep.mubr.msk.f32.mxu0 %vm2853_vm0, %v2854_v1 }
 0xe8f   :  { %2477 = vmatprep.subr.bf16.mxu0 %v2852_v0 }
 0xe92   :  { %2479 = vmatpush3.bf16.msra.mxu0 %v3002_v14 }
 0xe93   :  { %2488 = vmatprep.subr.bf16.mxu0 %v2852_v0 }
 0xf60   :  { %v841_v8 = vpop.f32.mrb[6].mxu0 }
 0xf61   :  { %v846_v10 = vrot.slane %v841_v8, 6  ;;  %v2302_v11 = vpop.f32.mrb[7].mxu0 }
 0xf63   :  { %v848_v12 = vadd.f32 %v846_v10, %v3025_v20 }
 0xf65   :  { %v2110_v13 = vmul.f32 -1.442695, %v848_v12 }
 0xf67   :  { %2590 = vpow2.f32 %v2110_v13 }
 0xf68   :  { %2592 = vtanh.f32 %v848_v12  ;;  %v1109_v12 = vld [vmem:[#allocation11 + $0x8] sm:$0xff] }
 0xf71   :  { %v2591_v15 = vpop.eup %2590 }
 0xf72   :  { %v853_v16 = vadd.f32 1.0, %v2591_v15  ;;  %v2593_v9 = vpop.eup %2592  ;;  %v1112_v15 = vld [vmem:[#allocation12] sm:$0xff] }
 0xf74   :  { %2594 = vrcp.f32 %v853_v16  ;;  %v1113_v16 = vld [vmem:[#allocation12 + $0x8] sm:$0xff] }
 0xf7e   :  { %v2595_v17 = vpop.eup %2594 }
 0xf7f   :  { %v856_v18 = vsel %vm3030_vm4, %v2593_v9, %v2595_v17  ;;  %v1110_v9 = vld [vmem:[#allocation11 + $0x10] sm:$0xff]  ;;  %v3156_v17 = vpack.c.bf16 %v1113_v16, %v1112_v15 }
 0xf80   :  { %862 = vrot.lane.b32.xlu1 %v856_v18, %s2855_s5  ;;  %v860_v22 = vmul.f32 %v858_v21, %v856_v18 }
 0xff2   :  { %v863_v14 = vpop.permute.xlu1 %862 }
 0xff3   :  { %v865_v19 = vmul.f32 %v863_v14, %v856_v18  ;;  %v1114_v14 = vld [vmem:[#allocation12 + $0x10] sm:$0xff] }
 0xff5   :  { %867 = vrot.lane.b32.xlu0 %v865_v19, %s2856_s16  ;;  %v1115_v19 = vld [vmem:[#allocation12 + $0x18] sm:$0xff] }
0x1067   :  { %v868_v24 = vpop.permute.xlu0 %867 }
0x1068   :  { %v870_v25 = vadd.f32 %v868_v24, %v860_v22  ;;  %v1204_v22 = vld [vmem:[#allocation6 + $0x2] sm:$0x3] }
0x106a   :  { %2596 = vtanh.f32 %v870_v25  ;;  %v970_v44 = vrot.slane %v870_v25, 6 }
0x1074   :  { %v2597_v27 = vpop.eup %2596 }
0x1075   :  { %873 = vrot.lane.b32.xlu1 %v2597_v27, %s2855_s5 }
0x10e7   :  { %v874_v28 = vpop.permute.xlu1 %873 }
0x10e8   :  { %v3123_v29 = vmul.f32 %v874_v28, %v856_v18  ;;  %v1111_v18 = vld [vmem:[#allocation11 + $0x18] sm:$0xff] }
0x10e9   :  { %v2484_v21 = vpack.c.bf16 %v1111_v18, %v1110_v9  ;;  %v1205_v28 = vld [vmem:[%s3300_s2 + $0x2] sm:$0x3] }
0x10ea   :  { %v882_v31 = vrot.slane %v3123_v29, 2 }
0x10ec   :  { %883 = vrot.lane.b32.xlu0 %v882_v31, %s2856_s16 }
0x115e   :  { %v884_v32 = vpop.permute.xlu0 %883 }
0x115f   :  { %2312 = vmatmul.mubr.msk.f32.vlgmr.msra.gmra.mrb[6].mxu1 %vm135_vm1, %v884_v32 }
0x1232   :  { %v953_v33 = vpop.f32.mrb[6].mxu1 }
0x1233   :  { %v958_v34 = vrot.slane %v953_v33, 4  ;;  %v2313_v35 = vpop.f32.mrb[7].mxu1 }
0x1235   :  { %v960_v36 = vadd.f32 %v958_v34, %v3025_v20 }
0x1237   :  { %v2112_v37 = vmul.f32 -1.442695, %v960_v36 }
0x1239   :  { %2598 = vpow2.f32 %v2112_v37 }
0x123a   :  { %2600 = vtanh.f32 %v960_v36  ;;  %v2115_v36 = vld [vmem:[%s3306_s8] ss:$0 sm:$0xff]  ;;  %s2857_s8 = smov [#allocation14]  }
0x123b   :  { %s2084_s20 = sshll.u32 %s2857_s8, 4  ;;  %s2085_s20 = int_to_ptr.vmem [resolvable:$true] %s2084_s20 }
0x123c   :  { %s2812_s21 = scalar_lea.vmem %s2085_s20, 16  ;;  %s2816_s23 = scalar_lea.vmem %s2085_s20, 32 }
0x123d   :  { %p2813_p6 = scmp.ne.s32.totalorder %s2085_s20, %s2812_s21  ;;  %p2817_p7 = scmp.lt.s32.totalorder %s2085_s20, %s2085_s20 }
0x123e   :  { %p2818_p8 = scmp.lt.s32.totalorder %s2816_s23, %s2812_s21 }
0x1240   :  { %p2819_p9 = por %p2818_p8, %p2817_p7 }
0x1242   :  { %p2820_p10 = pnand %p2819_p9, %p2813_p6 }
0x1243   :  { %v2599_v38 = vpop.eup %2598 }
0x1244   :  { %v965_v39 = vadd.f32 1.0, %v2599_v38  ;;  %v2601_v40 = vpop.eup %2600 }
0x1246   :  { %2602 = vrcp.f32 %v965_v39 }
0x1250   :  { %v2603_v41 = vpop.eup %2602 }
0x1251   :  { %v968_v42 = vsel %vm3030_vm4, %v2601_v40, %v2603_v41 }
0x1252   :  { %974 = vrot.lane.b32.xlu1 %v968_v42, %s2855_s5  ;;  %v972_v45 = vmul.f32 %v970_v44, %v968_v42 }
0x12c4   :  { %v975_v43 = vpop.permute.xlu1 %974 }
0x12c5   :  { %v977_v23 = vmul.f32 %v975_v43, %v968_v42 }
0x12c7   :  { %979 = vrot.lane.b32.xlu0 %v977_v23, %s2856_s16 }
0x1339   :  { %v980_v46 = vpop.permute.xlu0 %979 }
0x133a   :  { %v982_v48 = vadd.f32 %v980_v46, %v972_v45 }
0x133c   :  { %2604 = vtanh.f32 %v982_v48 }
0x1346   :  { %v2605_v49 = vpop.eup %2604 }
0x1347   :  { %985 = vrot.lane.b32.xlu1 %v2605_v49, %s2855_s5 }
0x13b9   :  { %v986_v50 = vpop.permute.xlu1 %985 }
0x13ba   :  { %v988_v51 = vmul.f32 %v986_v50, %v968_v42 }
0x13bc   :  { %v994_v52 = vrot.slane %v988_v51, 4 }
0x13be   :  { %995 = vrot.lane.b32.xlu0 %v994_v52, %s2856_s16 }
0x1430   :  { %v996_v53 = vpop.permute.xlu0 %995 }
0x1431   :  { %2323 = vmatmul.mubr.msk.f32.vlgmr.msra.gmra.mrb[8].mxu0 %vm135_vm1, %v996_v53 }
0x1432   :  { %2344 = vmatprep.mubr.msk.f32.mxu0 %vm2853_vm0, %v2854_v1  ;;  %2490 = vmatpush3.bf16.msra.mxu0 %v3156_v17 }
0x1433   :  { %2491 = vmatprep.subr.bf16.mxu0 %v2852_v0 }
0x1504   :  { %v1065_v54 = vpop.f32.mrb[8].mxu0 }
0x1505   :  { %v1070_v55 = vrot.slane %v1065_v54, 2  ;;  %v2324_v56 = vpop.f32.mrb[9].mxu0 }
0x1507   :  { %v1072_v57 = vadd.f32 %v1070_v55, %v3025_v20  ;;  %v1082_v20 = vrot.slane %v982_v48, 6 }
0x1509   :  { %v2114_v58 = vmul.f32 -1.442695, %v1072_v57 }
0x150b   :  { %2606 = vpow2.f32 %v2114_v58 }
0x150c   :  { %2608 = vtanh.f32 %v1072_v57 }
0x1515   :  { %v2607_v59 = vpop.eup %2606 }
0x1516   :  { %v1077_v60 = vadd.f32 1.0, %v2607_v59  ;;  %v2609_v61 = vpop.eup %2608 }
0x1518   :  { %2610 = vrcp.f32 %v1077_v60 }
0x1522   :  { %v2611_v62 = vpop.eup %2610 }
0x1523   :  { %v1080_v2 = vsel %vm3030_vm4, %v2609_v61, %v2611_v62 }
0x1524   :  { %1086 = vrot.lane.b32.xlu1 %v1080_v2, %s2855_s5  ;;  %v1084_v5 = vmul.f32 %v1082_v20, %v1080_v2 }
0x1596   :  { %v1087_v3 = vpop.permute.xlu1 %1086 }
0x1597   :  { %v1089_v4 = vmul.f32 %v1087_v3, %v1080_v2 }
0x1599   :  { %1091 = vrot.lane.b32.xlu0 %v1089_v4, %s2856_s16 }
0x159d   :  { %433 = vrot.lane.b32.xlu0 %v3058_v63, %s2856_s16 }
0x15a1   :  { %659 = vrot.lane.b32.xlu0 %v3092_v47, %s2856_s16  ;;  %v1108_v47 = vld [vmem:[#allocation11] sm:$0xff] }
0x15a2   :  { %v2480_v13 = vpack.c.bf16 %v1109_v12, %v1108_v47 }
0x15a4   :  { %2481 = vmatprep.subr.bf16.mxu1 %v2480_v13 }
0x15a5   :  { %990 = vrot.lane.b32.xlu0 %v988_v51, %s2856_s16  ;;  %2483 = vmatpush3.bf16.msra.mxu1 %v2480_v13 }
0x15a6   :  { %2485 = vmatprep.subr.bf16.mxu1 %v2484_v21 }
0x15a9   :  { %2487 = vmatpush3.bf16.msra.mxu1 %v2484_v21 }
0x15aa   :  { %2494 = vmatprep.subr.bf16.mxu1 %v2852_v0 }
0x160b   :  { %v1092_v6 = vpop.permute.xlu0 %1091 }
0x160c   :  { %v1094_v7 = vadd.f32 %v1092_v6, %v1084_v5 }
0x160e   :  { %2612 = vtanh.f32 %v1094_v7 }
0x160f   :  { %v434_v8 = vpop.permute.xlu0 %433 }
0x1610   :  { %437 = vst.msk [vmem:[#allocation2] sm:$0xc] %vm436_vm6, %v434_v8 }
0x1613   :  { %v660_v10 = vpop.permute.xlu0 %659 }
0x1614   :  { %663 = vst.msk [vmem:[#allocation2] sm:$0xc0] %vm662_vm7, %v660_v10 }
0x1617   :  { %v991_v63 = vpop.permute.xlu0 %990 }
0x1618   :  { %v2613_v11 = vpop.eup %2612  ;;  %993 = vst.msk [vmem:[#allocation2 + $0x8] sm:$0x30] %vm549_vm8, %v991_v63 }
0x1619   :  { %1097 = vrot.lane.b32.xlu1 %v2613_v11, %s2855_s5 }
0x161d   :  { %546 = vrot.lane.b32.xlu1 %v3075_v26, %s2856_s16  ;;  %v3159_v26 = vpack.c.bf16 %v1115_v19, %v1114_v14 }
0x161f   :  { %2493 = vmatpush3.bf16.msra.mxu0 %v3159_v26 }
0x1620   :  { %2500 = vmatprep.subr.bf16.mxu0 %v2852_v0 }
0x1621   :  { %878 = vrot.lane.b32.xlu1 %v3123_v29, %s2856_s16 }
0x1622   :  { %2345 = vmatmul.mubr.msk.f32.vlgmr.msra.gmra.mrb[10].mxu0 %vm135_vm1, %v1204_v22 }
0x1623   :  { %2502 = vmatpush3.bf16.msra.mxu0 %v3156_v17  ;;  %2366 = vmatprep.mubr.msk.f32.mxu0 %vm2853_vm0, %v2854_v1 }
0x1624   :  { %2503 = vmatprep.subr.bf16.mxu0 %v2852_v0 }
0x1627   :  { %2505 = vmatpush3.bf16.msra.mxu0 %v3159_v26 }
0x1628   :  { %2512 = vmatprep.subr.bf16.mxu0 %v2852_v0 }
0x168b   :  { %v1098_v24 = vpop.permute.xlu1 %1097 }
0x168c   :  { %v1100_v25 = vmul.f32 %v1098_v24, %v1080_v2 }
0x168e   :  { %1102 = vrot.lane.b32.xlu1 %v1100_v25, %s2856_s16 }
0x168f   :  { %v547_v27 = vpop.permute.xlu1 %546 }
0x1690   :  { %550 = vst.msk [vmem:[#allocation2] sm:$0x30] %vm549_vm8, %v547_v27 }
0x1692   :  { %1289 = vrot.lane.b32.xlu1 %v1205_v28, %s2856_s16 }
0x1693   :  { %v879_v29 = vpop.permute.xlu1 %878 }
0x1694   :  { %881 = vst.msk [vmem:[#allocation2 + $0x8] sm:$0xc] %vm436_vm6, %v879_v29 }
0x1697   :  { %v1106_v31 = vld [vmem:[#allocation2] sm:$0xff] }
0x1698   :  { %2333 = vmatprep.mubr.msk.f32.mxu1 %vm135_vm1, %v1106_v31 }
0x16f5   :  { %v1275_v34 = vpop.f32.mrb[10].mxu0 }
0x16f6   :  { %v2346_v35 = vpop.f32.mrb[11].mxu0 }
0x1700   :  { %v1103_v32 = vpop.permute.xlu1 %1102 }
0x1701   :  { %1105 = vst.msk [vmem:[#allocation2 + $0x8] sm:$0xc0] %vm662_vm7, %v1103_v32 }
0x1704   :  { %v1290_v50 = vpop.permute.xlu1 %1289 }
0x1708   :  { %v1107_v33 = vld [vmem:[#allocation2 + $0x8] sm:$0xff] }
0x1709   :  { %2334 = vmatmul.mubr.msk.f32.vlgmr.msra.gmra.mrb[8].mxu1 %vm135_vm1, %v1107_v33 }
0x170a   :  { %2496 = vmatpush3.bf16.msra.mxu1 %v3156_v17  ;;  %2355 = vmatprep.mubr.msk.f32.mxu1 %vm2853_vm0, %v2854_v1 }
0x170b   :  { %2497 = vmatprep.subr.bf16.mxu1 %v2852_v0 }
0x170e   :  { %2499 = vmatpush3.bf16.msra.mxu1 %v3159_v26 }
0x170f   :  { %2506 = vmatprep.subr.bf16.mxu1 %v2852_v0 }
0x17dc   :  { %v2335_v37 = vpop.f32.mrb[8].mxu1 }
0x17dd   :  { %v3191_v38 = vadd.f32 %v2335_v37, %v2115_v36  ;;  %v1195_v39 = vpop.f32.mrb[9].mxu1 }
0x17de   :  { %v3193_v40 = vadd.f32 %v2115_v36, %v1195_v39 }
0x17e0   :  { %v1279_v41 = vadd.f32 %v1275_v34, %v3193_v40 }
0x17e2   :  { %v2119_v42 = vmul.f32 -1.442695, %v1279_v41 }
0x17e4   :  { %2614 = vpow2.f32 %v2119_v42 }
0x17e5   :  { %2616 = vtanh.f32 %v1279_v41 }
0x17ee   :  { %v2615_v43 = vpop.eup %2614 }
0x17ef   :  { %v1284_v23 = vadd.f32 1.0, %v2615_v43  ;;  %v2617_v44 = vpop.eup %2616 }
0x17f1   :  { %2618 = vrcp.f32 %v1284_v23 }
0x17fb   :  { %v2619_v45 = vpop.eup %2618 }
0x17fc   :  { %v1287_v46 = vsel %vm3030_vm4, %v2617_v44, %v2619_v45 }
0x17fd   :  { %1294 = vrot.lane.b32.xlu0 %v1287_v46, %s2855_s5  ;;  %v1292_v51 = vmul.f32 %v1290_v50, %v1287_v46 }
0x186f   :  { %v1295_v48 = vpop.permute.xlu0 %1294 }
0x1870   :  { %v1297_v49 = vmul.f32 %v1295_v48, %v1287_v46 }
0x1872   :  { %1299 = vrot.lane.b32.xlu0 %v1297_v49, %s2856_s16 }
0x18e4   :  { %v1300_v52 = vpop.permute.xlu0 %1299 }
0x18e5   :  { %v1302_v53 = vadd.f32 %v1300_v52, %v1292_v51 }
0x18e7   :  { %2620 = vtanh.f32 %v1302_v53  ;;  %v1397_v8 = vrot.slane %v1302_v53, 6 }
0x18f1   :  { %v2621_v54 = vpop.eup %2620 }
0x18f2   :  { %1305 = vrot.lane.b32.xlu1 %v2621_v54, %s2855_s5 }
0x1964   :  { %v1306_v55 = vpop.permute.xlu1 %1305 }
0x1965   :  { %v1308_v56 = vmul.f32 %v1306_v55, %v1287_v46 }
0x1967   :  { %1310 = vrot.lane.b32.xlu0 %v1308_v56, %s2856_s16 }
0x19d9   :  { %v1311_v57 = vpop.permute.xlu0 %1310 }
0x19da   :  { %2356 = vmatmul.mubr.msk.f32.vlgmr.msra.gmra.mrb[10].mxu1 %vm135_vm1, %v1311_v57 }
0x19db   :  { %2508 = vmatpush3.bf16.msra.mxu1 %v3156_v17  ;;  %2377 = vmatprep.mubr.msk.f32.mxu1 %vm2853_vm0, %v2854_v1 }
0x19dc   :  { %2509 = vmatprep.subr.bf16.mxu1 %v2852_v0 }
0x19df   :  { %2511 = vmatpush3.bf16.msra.mxu1 %v3159_v26 }
0x19e0   :  { %2518 = vmatprep.subr.bf16.mxu1 %v2852_v0 }
0x1aad   :  { %v1380_v58 = vpop.f32.mrb[10].mxu1 }
0x1aae   :  { %v1385_v59 = vrot.slane %v1380_v58, 6  ;;  %v2357_v60 = vpop.f32.mrb[11].mxu1 }
0x1ab0   :  { %v1387_v61 = vadd.f32 %v1385_v59, %v3193_v40 }
0x1ab2   :  { %v2121_v62 = vmul.f32 -1.442695, %v1387_v61 }
0x1ab4   :  { %2622 = vpow2.f32 %v2121_v62 }
0x1ab5   :  { %2624 = vtanh.f32 %v1387_v61 }
0x1abe   :  { %v2623_v2 = vpop.eup %2622 }
0x1abf   :  { %v1392_v3 = vadd.f32 1.0, %v2623_v2  ;;  %v2625_v4 = vpop.eup %2624 }
0x1ac1   :  { %2626 = vrcp.f32 %v1392_v3 }
0x1acb   :  { %v2627_v20 = vpop.eup %2626 }
0x1acc   :  { %v1395_v5 = vsel %vm3030_vm4, %v2625_v4, %v2627_v20 }
0x1acd   :  { %1401 = vrot.lane.b32.xlu1 %v1395_v5, %s2855_s5  ;;  %v1399_v10 = vmul.f32 %v1397_v8, %v1395_v5 }
0x1b3f   :  { %v1402_v6 = vpop.permute.xlu1 %1401 }
0x1b40   :  { %v1404_v7 = vmul.f32 %v1402_v6, %v1395_v5 }
0x1b42   :  { %1406 = vrot.lane.b32.xlu0 %v1404_v7, %s2856_s16 }
0x1bb4   :  { %v1407_v63 = vpop.permute.xlu0 %1406 }
0x1bb5   :  { %v1409_v11 = vadd.f32 %v1407_v63, %v1399_v10 }
0x1bb7   :  { %2628 = vtanh.f32 %v1409_v11  ;;  %v1505_v32 = vrot.slane %v1409_v11, 6 }
0x1bc1   :  { %v2629_v47 = vpop.eup %2628 }
0x1bc2   :  { %1412 = vrot.lane.b32.xlu1 %v2629_v47, %s2855_s5 }
0x1c34   :  { %v1413_v12 = vpop.permute.xlu1 %1412 }
0x1c35   :  { %v1415_v13 = vmul.f32 %v1413_v12, %v1395_v5 }
0x1c37   :  { %v1417_v15 = vrot.slane %v1415_v13, 2 }
0x1c39   :  { %1418 = vrot.lane.b32.xlu0 %v1417_v15, %s2856_s16 }
0x1cab   :  { %v1419_v16 = vpop.permute.xlu0 %1418 }
0x1cac   :  { %2367 = vmatmul.mubr.msk.f32.vlgmr.msra.gmra.mrb[12].mxu0 %vm135_vm1, %v1419_v16 }
0x1cad   :  { %2514 = vmatpush3.bf16.msra.mxu0 %v3156_v17  ;;  %2388 = vmatprep.mubr.msk.f32.mxu0 %vm2853_vm0, %v2854_v1 }
0x1cae   :  { %2515 = vmatprep.subr.bf16.mxu0 %v2852_v0 }
0x1cb1   :  { %2517 = vmatpush3.bf16.msra.mxu0 %v3159_v26 }
0x1cb2   :  { %2524 = vmatprep.subr.bf16.mxu0 %v2852_v0 }
0x1d7f   :  { %v1488_v9 = vpop.f32.mrb[12].mxu0 }
0x1d80   :  { %v1493_v18 = vrot.slane %v1488_v9, 4  ;;  %v2368_v14 = vpop.f32.mrb[13].mxu0 }
0x1d82   :  { %v1495_v19 = vadd.f32 %v1493_v18, %v3193_v40 }
0x1d84   :  { %v2123_v21 = vmul.f32 -1.442695, %v1495_v19 }
0x1d86   :  { %2630 = vpow2.f32 %v2123_v21 }
0x1d87   :  { %2632 = vtanh.f32 %v1495_v19 }
0x1d90   :  { %v2631_v22 = vpop.eup %2630 }
0x1d91   :  { %v1500_v24 = vadd.f32 1.0, %v2631_v22  ;;  %v2633_v25 = vpop.eup %2632 }
0x1d93   :  { %2634 = vrcp.f32 %v1500_v24 }
0x1d9d   :  { %v2635_v27 = vpop.eup %2634 }
0x1d9e   :  { %v1503_v28 = vsel %vm3030_vm4, %v2633_v25, %v2635_v27 }
0x1d9f   :  { %1509 = vrot.lane.b32.xlu1 %v1503_v28, %s2855_s5  ;;  %v1507_v33 = vmul.f32 %v1505_v32, %v1503_v28 }
0x1e11   :  { %v1510_v29 = vpop.permute.xlu1 %1509 }
0x1e12   :  { %v1512_v31 = vmul.f32 %v1510_v29, %v1503_v28 }
0x1e14   :  { %1514 = vrot.lane.b32.xlu0 %v1512_v31, %s2856_s16 }
0x1e86   :  { %v1515_v34 = vpop.permute.xlu0 %1514 }
0x1e87   :  { %v1517_v35 = vadd.f32 %v1515_v34, %v1507_v33 }
0x1e89   :  { %2636 = vtanh.f32 %v1517_v35  ;;  %v1613_v55 = vrot.slane %v1517_v35, 6 }
0x1e93   :  { %v2637_v36 = vpop.eup %2636 }
0x1e94   :  { %1520 = vrot.lane.b32.xlu1 %v2637_v36, %s2855_s5 }
0x1f06   :  { %v1521_v37 = vpop.permute.xlu1 %1520 }
0x1f07   :  { %v1523_v39 = vmul.f32 %v1521_v37, %v1503_v28 }
0x1f09   :  { %v1525_v41 = vrot.slane %v1523_v39, 4 }
0x1f0b   :  { %1526 = vrot.lane.b32.xlu0 %v1525_v41, %s2856_s16 }
0x1f7d   :  { %v1527_v42 = vpop.permute.xlu0 %1526 }
0x1f7e   :  { %2378 = vmatmul.mubr.msk.f32.vlgmr.msra.gmra.mrb[12].mxu1 %vm135_vm1, %v1527_v42 }
0x1f7f   :  { %2520 = vmatpush3.bf16.msra.mxu1 %v3156_v17  ;;  %2399 = vmatprep.mubr.msk.f32.mxu1 %vm2853_vm0, %v2854_v1 }
0x1f80   :  { %2521 = vmatprep.subr.bf16.mxu1 %v2852_v0 }
0x1f83   :  { %2523 = vmatpush3.bf16.msra.mxu1 %v3159_v26 }
0x1f84   :  { %2530 = vmatprep.subr.bf16.mxu1 %v2852_v0 }
0x2051   :  { %v1596_v43 = vpop.f32.mrb[12].mxu1 }
0x2052   :  { %v1601_v23 = vrot.slane %v1596_v43, 2  ;;  %v2379_v44 = vpop.f32.mrb[13].mxu1 }
0x2054   :  { %v1603_v45 = vadd.f32 %v1601_v23, %v3193_v40 }
0x2056   :  { %v2125_v46 = vmul.f32 -1.442695, %v1603_v45 }
0x2058   :  { %2638 = vpow2.f32 %v2125_v46 }
0x2059   :  { %2640 = vtanh.f32 %v1603_v45 }
0x2062   :  { %v2639_v48 = vpop.eup %2638 }
0x2063   :  { %v1608_v49 = vadd.f32 1.0, %v2639_v48  ;;  %v2641_v50 = vpop.eup %2640 }
0x2065   :  { %2642 = vrcp.f32 %v1608_v49 }
0x206f   :  { %v2643_v51 = vpop.eup %2642 }
0x2070   :  { %v1611_v52 = vsel %vm3030_vm4, %v2641_v50, %v2643_v51 }
0x2071   :  { %1617 = vrot.lane.b32.xlu1 %v1611_v52, %s2855_s5  ;;  %v1615_v56 = vmul.f32 %v1613_v55, %v1611_v52 }
0x20e3   :  { %v1618_v53 = vpop.permute.xlu1 %1617 }
0x20e4   :  { %v1620_v54 = vmul.f32 %v1618_v53, %v1611_v52 }
0x20e6   :  { %1622 = vrot.lane.b32.xlu0 %v1620_v54, %s2856_s16 }
0x2158   :  { %v1623_v40 = vpop.permute.xlu0 %1622 }
0x2159   :  { %v1625_v57 = vadd.f32 %v1623_v40, %v1615_v56 }
0x215b   :  { %2644 = vtanh.f32 %v1625_v57  ;;  %v1718_v47 = vrot.slane %v1625_v57, 6 }
0x2165   :  { %v2645_v58 = vpop.eup %2644 }
0x2166   :  { %1628 = vrot.lane.b32.xlu1 %v2645_v58, %s2855_s5 }
0x21d8   :  { %v1629_v59 = vpop.permute.xlu1 %1628 }
0x21d9   :  { %v1631_v60 = vmul.f32 %v1629_v59, %v1611_v52 }
0x21db   :  { %v1633_v61 = vrot.slane %v1631_v60, 6 }
0x21dd   :  { %1634 = vrot.lane.b32.xlu0 %v1633_v61, %s2856_s16 }
0x224f   :  { %v1635_v62 = vpop.permute.xlu0 %1634 }
0x2250   :  { %2389 = vmatmul.mubr.msk.f32.vlgmr.msra.gmra.mrb[14].mxu0 %vm135_vm1, %v1635_v62 }
0x2251   :  { %2526 = vmatpush3.bf16.msra.mxu0 %v3156_v17  ;;  %2410 = vmatprep.mubr.msk.f32.mxu0 %vm2853_vm0, %v2854_v1 }
0x2252   :  { %2527 = vmatprep.subr.bf16.mxu0 %v2852_v0 }
0x2255   :  { %2529 = vmatpush3.bf16.msra.mxu0 %v3159_v26 }
0x2323   :  { %v1704_v2 = vpop.f32.mrb[14].mxu0 }
0x2324   :  { %v1708_v3 = vadd.f32 %v1704_v2, %v3191_v38  ;;  %v2390_v4 = vpop.f32.mrb[15].mxu0 }
0x2326   :  { %v2127_v20 = vmul.f32 -1.442695, %v1708_v3 }
0x2328   :  { %2646 = vpow2.f32 %v2127_v20 }
0x2329   :  { %2648 = vtanh.f32 %v1708_v3 }
0x2332   :  { %v2647_v5 = vpop.eup %2646 }
0x2333   :  { %v1713_v6 = vadd.f32 1.0, %v2647_v5  ;;  %v2649_v7 = vpop.eup %2648 }
0x2335   :  { %2650 = vrcp.f32 %v1713_v6 }
0x233f   :  { %v2651_v8 = vpop.eup %2650 }
0x2340   :  { %v1716_v10 = vsel %vm3030_vm4, %v2649_v7, %v2651_v8 }
0x2341   :  { %1722 = vrot.lane.b32.xlu1 %v1716_v10, %s2855_s5  ;;  %v1720_v12 = vmul.f32 %v1718_v47, %v1716_v10 }
0x23b3   :  { %v1723_v63 = vpop.permute.xlu1 %1722 }
0x23b4   :  { %v1725_v11 = vmul.f32 %v1723_v63, %v1716_v10 }
0x23b6   :  { %1727 = vrot.lane.b32.xlu0 %v1725_v11, %s2856_s16 }
0x2428   :  { %v1728_v13 = vpop.permute.xlu0 %1727 }
0x2429   :  { %v1730_v15 = vadd.f32 %v1728_v13, %v1720_v12 }
0x242b   :  { %2652 = vtanh.f32 %v1730_v15  ;;  %v1825_v31 = vrot.slane %v1730_v15, 6 }
0x2435   :  { %v2653_v16 = vpop.eup %2652 }
0x2436   :  { %1733 = vrot.lane.b32.xlu1 %v2653_v16, %s2855_s5 }
0x24a8   :  { %v1734_v9 = vpop.permute.xlu1 %1733 }
0x24a9   :  { %v1736_v18 = vmul.f32 %v1734_v9, %v1716_v10 }
0x24ab   :  { %1738 = vrot.lane.b32.xlu0 %v1736_v18, %s2856_s16 }
0x251d   :  { %v1739_v14 = vpop.permute.xlu0 %1738 }
0x251e   :  { %2400 = vmatmul.mubr.msk.f32.vlgmr.msra.gmra.mrb[14].mxu1 %vm135_vm1, %v1739_v14 }
0x251f   :  { %2532 = vmatpush3.bf16.msra.mxu1 %v3156_v17  ;;  %2421 = vmatprep.mubr.msk.f32.mxu1 %vm2853_vm0, %v2854_v1 }
0x2520   :  { %2533 = vmatprep.subr.bf16.mxu1 %v2852_v0 }
0x2523   :  { %2535 = vmatpush3.bf16.msra.mxu1 %v3159_v26 }
0x25f1   :  { %v1808_v19 = vpop.f32.mrb[14].mxu1 }
0x25f2   :  { %v1813_v21 = vrot.slane %v1808_v19, 6  ;;  %v2401_v22 = vpop.f32.mrb[15].mxu1 }
0x25f4   :  { %v1815_v24 = vadd.f32 %v1813_v21, %v3191_v38 }
0x25f6   :  { %v2129_v25 = vmul.f32 -1.442695, %v1815_v24 }
0x25f8   :  { %2654 = vpow2.f32 %v2129_v25 }
0x25f9   :  { %2656 = vtanh.f32 %v1815_v24 }
0x2602   :  { %v2655_v27 = vpop.eup %2654 }
0x2603   :  { %v1820_v28 = vadd.f32 1.0, %v2655_v27  ;;  %v2657_v29 = vpop.eup %2656 }
0x2605   :  { %2658 = vrcp.f32 %v1820_v28 }
0x260f   :  { %v2659_v17 = vpop.eup %2658 }
0x2610   :  { %v1823_v1 = vsel %vm3030_vm4, %v2657_v29, %v2659_v17 }
0x2611   :  { %1829 = vrot.lane.b32.xlu1 %v1823_v1, %s2855_s5  ;;  %v1827_v32 = vmul.f32 %v1825_v31, %v1823_v1 }
0x2683   :  { %v1830_v0 = vpop.permute.xlu1 %1829 }
0x2684   :  { %v1832_v26 = vmul.f32 %v1830_v0, %v1823_v1 }
0x2686   :  { %1834 = vrot.lane.b32.xlu0 %v1832_v26, %s2856_s16 }
0x26f8   :  { %v1835_v33 = vpop.permute.xlu0 %1834 }
0x26f9   :  { %v1837_v34 = vadd.f32 %v1835_v33, %v1827_v32 }
0x26fb   :  { %2660 = vtanh.f32 %v1837_v34  ;;  %v1933_v54 = vrot.slane %v1837_v34, 6 }
0x2705   :  { %v2661_v35 = vpop.eup %2660 }
0x2706   :  { %1840 = vrot.lane.b32.xlu1 %v2661_v35, %s2855_s5 }
0x2778   :  { %v1841_v36 = vpop.permute.xlu1 %1840 }
0x2779   :  { %v1843_v37 = vmul.f32 %v1841_v36, %v1823_v1 }
0x277b   :  { %v1845_v39 = vrot.slane %v1843_v37, 2 }
0x277d   :  { %1846 = vrot.lane.b32.xlu0 %v1845_v39, %s2856_s16 }
0x27ef   :  { %v1847_v41 = vpop.permute.xlu0 %1846 }
0x27f0   :  { %2411 = vmatmul.mubr.msk.f32.vlgmr.msra.gmra.mrb[16].mxu0 %vm135_vm1, %v1847_v41 }
0x28c3   :  { %v1916_v42 = vpop.f32.mrb[16].mxu0 }
0x28c4   :  { %v1921_v43 = vrot.slane %v1916_v42, 4  ;;  %v2412_v23 = vpop.f32.mrb[17].mxu0 }
0x28c6   :  { %v1923_v44 = vadd.f32 %v1921_v43, %v3191_v38 }
0x28c8   :  { %v2131_v45 = vmul.f32 -1.442695, %v1923_v44 }
0x28ca   :  { %2662 = vpow2.f32 %v2131_v45 }
0x28cb   :  { %2664 = vtanh.f32 %v1923_v44 }
0x28d4   :  { %v2663_v46 = vpop.eup %2662 }
0x28d5   :  { %v1928_v48 = vadd.f32 1.0, %v2663_v46  ;;  %v2665_v49 = vpop.eup %2664 }
0x28d7   :  { %2666 = vrcp.f32 %v1928_v48 }
0x28e1   :  { %v2667_v50 = vpop.eup %2666 }
0x28e2   :  { %v1931_v51 = vsel %vm3030_vm4, %v2665_v49, %v2667_v50 }
0x28e3   :  { %1937 = vrot.lane.b32.xlu1 %v1931_v51, %s2855_s5  ;;  %v1935_v55 = vmul.f32 %v1933_v54, %v1931_v51 }
0x2955   :  { %v1938_v52 = vpop.permute.xlu1 %1937 }
0x2956   :  { %v1940_v53 = vmul.f32 %v1938_v52, %v1931_v51 }
0x2958   :  { %1942 = vrot.lane.b32.xlu0 %v1940_v53, %s2856_s16 }
0x29ca   :  { %v1943_v56 = vpop.permute.xlu0 %1942 }
0x29cb   :  { %v1945_v40 = vadd.f32 %v1943_v56, %v1935_v55 }
0x29cd   :  { %2668 = vtanh.f32 %v1945_v40  ;;  %v2041_v47 = vrot.slane %v1945_v40, 6 }
0x29d7   :  { %v2669_v57 = vpop.eup %2668 }
0x29d8   :  { %1948 = vrot.lane.b32.xlu1 %v2669_v57, %s2855_s5 }
0x2a4a   :  { %v1949_v58 = vpop.permute.xlu1 %1948 }
0x2a4b   :  { %v1951_v59 = vmul.f32 %v1949_v58, %v1931_v51 }
0x2a4d   :  { %v1953_v60 = vrot.slane %v1951_v59, 4 }
0x2a4f   :  { %1954 = vrot.lane.b32.xlu0 %v1953_v60, %s2856_s16 }
0x2ac1   :  { %v1955_v61 = vpop.permute.xlu0 %1954 }
0x2ac2   :  { %2422 = vmatmul.mubr.msk.f32.vlgmr.msra.gmra.mrb[16].mxu1 %vm135_vm1, %v1955_v61 }
0x2b95   :  { %v2024_v62 = vpop.f32.mrb[16].mxu1 }
0x2b96   :  { %v2029_v2 = vrot.slane %v2024_v62, 2  ;;  %v2423_v3 = vpop.f32.mrb[17].mxu1 }
0x2b98   :  { %v2031_v4 = vadd.f32 %v2029_v2, %v3191_v38 }
0x2b9a   :  { %v2133_v20 = vmul.f32 -1.442695, %v2031_v4 }
0x2b9c   :  { %2670 = vpow2.f32 %v2133_v20 }
0x2b9d   :  { %2672 = vtanh.f32 %v2031_v4 }
0x2ba6   :  { %v2671_v5 = vpop.eup %2670 }
0x2ba7   :  { %v2036_v6 = vadd.f32 1.0, %v2671_v5  ;;  %v2673_v7 = vpop.eup %2672 }
0x2ba9   :  { %2674 = vrcp.f32 %v2036_v6 }
0x2bb3   :  { %v2675_v8 = vpop.eup %2674 }
0x2bb4   :  { %v2039_v10 = vsel %vm3030_vm4, %v2673_v7, %v2675_v8 }
0x2bb5   :  { %2045 = vrot.lane.b32.xlu1 %v2039_v10, %s2855_s5  ;;  %v2043_v12 = vmul.f32 %v2041_v47, %v2039_v10 }
0x2c27   :  { %v2046_v63 = vpop.permute.xlu1 %2045 }
0x2c28   :  { %v2048_v11 = vmul.f32 %v2046_v63, %v2039_v10 }
0x2c2a   :  { %2050 = vrot.lane.b32.xlu0 %v2048_v11, %s2856_s16 }
0x2c9c   :  { %v2051_v38 = vpop.permute.xlu0 %2050 }
0x2c9d   :  { %v2053_v13 = vadd.f32 %v2051_v38, %v2043_v12 }
0x2c9f   :  { %2676 = vtanh.f32 %v2053_v13 }
0x2ca9   :  { %v2677_v15 = vpop.eup %2676 }
0x2caa   :  { %2056 = vrot.lane.b32.xlu1 %v2677_v15, %s2855_s5 }
0x2d1c   :  { %v2057_v16 = vpop.permute.xlu1 %2056 }
0x2d1d   :  { %v2059_v9 = vmul.f32 %v2057_v16, %v2039_v10 }
0x2d1f   :  { %v2061_v18 = vrot.slane %v2059_v9, 1 }
0x2d21   :  { %v2063_v14 = vsub.f32 %v2059_v9, %v2061_v18 }
0x2d23   :  { %v2064_v30 = vand.u32 2147483647, %v2063_v14 }
0x2d25   :  { %2066 = vrot.lane.b32.xlu0 %v2064_v30, %s2856_s16 }
0x2d97   :  { %v2067_v19 = vpop.permute.xlu0 %2066 }
0x2d98   :  { %v2070_v21 = vsel %vm2069_vm9, %v2067_v19, 0.0 }
0x2d99   :  { %2071 = vadd.xlane.f32.xlu1 %v2070_v21 }
0x2e26   :  { %v2072_v22 = vpop.xlane.xlu1 %2071 }
0x2e27   :  { %v2073_v24 = vsub.f32 0.0, %v2072_v22 }
0x2e29   :  { %v2074_v25 = vmul.f32 1.442695, %v2073_v24 }
0x2e2b   :  { %2678 = vpow2.f32 %v2074_v25 }
0x2e35   :  { %v2679_v27 = vpop.eup %2678 }
0x2e36   :  { %v2076_v28 = vmul.f32 5.0, %v2679_v27 }
0x2e38   :  { %2077 = vst [vmem:[#allocation14 - $0x6] sm:$0x40] %v2076_v28 }
0x2e39   :  { %2823 = shalt.err (!%p2820_p10)
}
0x2e3a   :  { %s2824_s3 = scalar_lea.hbm %s3307_s9, 16 }
0x2e3b   :  { %p2825_p11 = scmp.ne.s32.totalorder %s3307_s9, %s2824_s3  ;;  %p2828_p12 = scmp.lt.u32.totalorder %s2824_s3, %s3307_s9 }
0x2e3d   :  { %p2830_p13 = pnand %p2828_p12, %p2825_p11 }
0x2e3f   :  { %2833 = shalt.err (!%p2830_p13)
}
0x2e40   :  { %2087 = dma.vmem_to_hbm [thread:$0]  %s2085_s20, 16, %s3307_s9, [#allocation5]  }
0x2e41   :  { %2842 = dma.done.wait [#allocation5], 16  }
0x2e42   :  { %2843 = vsyncadd [#allocation5], 4294967280 }
0x2e43   :  { %2091 = vsyncpa [#allocation4], 1 }
0x2e44   :  { %2092 = vsyncpa [#allocation7], 1 }
0x2e45   :  { %2093 = vsyncpa [#allocation10], 1 }
0x2e46   :  { %2094 = vsyncpa [#allocation13], 1 }
0x2e47   :  { %2095 = vsyncpa [#allocation5], 1 }

</bundles_post_ra>
